<compile_context>
chip_gen: v6e
topology: v6e:2x2x1
jax: 0.10.0
libtpu: 0.0.40
codegen_flags: <defaults>
</compile_context>

<pallas_src>
import functools
import math

import jax
import jax.numpy as jnp
from jax.experimental import pallas as pl
from jax.experimental.pallas import tpu as pltpu

LANE = 128


def _round_up(n, m):
    return ((n + m - 1) // m) * m


# ----------------------------------------------------------------------------
# Fused residual-block kernel: conv1+ReLU -> conv2+ReLU (+ skip 1x1 conv) + residual
# ----------------------------------------------------------------------------
def _tcn_block_kernel(*refs, dilation, halo8, has_skip):
    if has_skip:
        (x_ref, w1_ref, b1_ref, w2_ref, b2_ref, ws_ref, bs_ref,
         o_ref, xbuf_ref, hbuf_ref) = refs
    else:
        (x_ref, w1_ref, b1_ref, w2_ref, b2_ref,
         o_ref, xbuf_ref, hbuf_ref) = refs
        ws_ref = bs_ref = None

    K = w1_ref.shape[0]
    d = dilation
    halo = (K - 1) * d                      # causal receptive-field overhang
    TL = x_ref.shape[1]                     # L-tile length (multiple of 8)
    b = pl.program_id(0)
    li = pl.program_id(1)

    # At the start of each batch row's L sweep, zero the causal-pad tail zone
    # (equivalent to torch.nn.ConstantPad1d(((K-1)*d, 0), 0)).
    @pl.when(li == 0)
    def _init():
        xbuf_ref[b, 0:halo8, :] = jnp.zeros((halo8, xbuf_ref.shape[2]), jnp.float32)
        hbuf_ref[b, 0:halo8, :] = jnp.zeros((halo8, hbuf_ref.shape[2]), jnp.float32)

    x_tile = x_ref[0].astype(jnp.float32)                      # (TL, Cin)
    xbuf_ref[b, halo8:halo8 + TL, :] = x_tile                  # aligned store

    def dilated_conv(buf_ref, w_ref, bias_ref):
        cout = w_ref.shape[2]
        acc = jnp.zeros((TL, cout), jnp.float32)
        for k in range(K):                                     # K small -> static unroll
            start = halo8 - halo + k * d                       # unaligned sublane read is fine
            xk = buf_ref[b, start:start + TL, :]               # (TL, Cin)
            acc = acc + jnp.dot(xk, w_ref[k], preferred_element_type=jnp.float32)
        return acc + bias_ref[...]                             # (1, Cout) broadcast

    h = jnp.maximum(dilated_conv(xbuf_ref, w1_ref, b1_ref), 0.0)   # conv1 + ReLU
    hbuf_ref[b, halo8:halo8 + TL, :] = h                            # keep h in VMEM only
    y = jnp.maximum(dilated_conv(hbuf_ref, w2_ref, b2_ref), 0.0)    # conv2 + ReLU
    # TODO(synk): torch.nn.Dropout is identity in eval mode; training-mode masking
    # (pltpu.prng_seed / prng_random_bits) not implemented.

    if has_skip:
        skip = jnp.dot(x_tile, ws_ref[0], preferred_element_type=jnp.float32) + bs_ref[...]
    else:
        skip = x_tile                                          # identity skip (Cin == Cout)

    o_ref[0] = (y + skip).astype(o_ref.dtype)

    # Carry the last `halo` valid rows into the tail zone for the next L tile
    # (aligned load + aligned store; value is materialized before the store).
    xbuf_ref[b, 0:halo8, :] = xbuf_ref[b, TL:TL + halo8, :]
    hbuf_ref[b, 0:halo8, :] = hbuf_ref[b, TL:TL + halo8, :]


def tcn_block_fused(x, w1, b1, w2, b2, w_skip, b_skip, *, dilation, tile_l):
    """One CausalConv1dBlock on channels-last, channel-padded x: (B, Lp, Cin)->(B, Lp, Ch)."""
    B, Lp, Cin = x.shape
    K, _, Ch = w1.shape
    halo = (K - 1) * dilation
    halo8 = max(_round_up(halo, 8), 8)
    Lt = Lp // tile_l
    has_skip = w_skip is not None

    kern = functools.partial(_tcn_block_kernel, dilation=dilation,
                             halo8=halo8, has_skip=has_skip)

    flops = 2 * B * Lp * K * (Cin * Ch + Ch * Ch)
    bytes_accessed = 4 * (x.size + B * Lp * Ch + w1.size + w2.size)
    if has_skip:
        flops += 2 * B * Lp * Cin * Ch
        bytes_accessed += 4 * w_skip.size

    in_specs = [
        pl.BlockSpec((1, tile_l, Cin), lambda b, l: (b, l, 0)),
        pl.BlockSpec((K, Cin, Ch), lambda b, l: (0, 0, 0)),
        pl.BlockSpec((1, Ch), lambda b, l: (0, 0)),
        pl.BlockSpec((K, Ch, Ch), lambda b, l: (0, 0, 0)),
        pl.BlockSpec((1, Ch), lambda b, l: (0, 0)),
    ]
    args = [x, w1, b1, w2, b2]
    if has_skip:
        in_specs += [pl.BlockSpec((1, Cin, Ch), lambda b, l: (0, 0, 0)),
                     pl.BlockSpec((1, Ch), lambda b, l: (0, 0))]
        args += [w_skip, b_skip]

    return pl.pallas_call(
        kern,
        out_shape=jax.ShapeDtypeStruct((B, Lp, Ch), x.dtype),
        grid=(B, Lt),
        in_specs=in_specs,
        out_specs=pl.BlockSpec((1, tile_l, Ch), lambda b, l: (b, l, 0)),
        scratch_shapes=[
            pltpu.VMEM((B, halo8 + tile_l, Cin), jnp.float32),   # x tile + causal tail
            pltpu.VMEM((B, halo8 + tile_l, Ch), jnp.float32),    # h tile + causal tail
        ],
        compiler_params=pltpu.CompilerParams(
            dimension_semantics=("parallel", "arbitrary")),
        cost_estimate=pl.CostEstimate(flops=flops, transcendentals=0,
                                      bytes_accessed=bytes_accessed),
    )(*args)


# ----------------------------------------------------------------------------
# 1x1 (pointwise) conv kernel — the classifier head
# ----------------------------------------------------------------------------
def _pointwise_conv_kernel(x_ref, w_ref, b_ref, o_ref):
    x = x_ref[0].astype(jnp.float32)                               # (TL, Cin)
    y = jnp.dot(x, w_ref[0], preferred_element_type=jnp.float32) + b_ref[...]
    o_ref[0] = y.astype(o_ref.dtype)


def pointwise_conv(x, w, bias, *, tile_l):
    B, Lp, Cin = x.shape
    Cout = w.shape[2]
    Lt = Lp // tile_l
    return pl.pallas_call(
        _pointwise_conv_kernel,
        out_shape=jax.ShapeDtypeStruct((B, Lp, Cout), x.dtype),
        grid=(B, Lt),
        in_specs=[pl.BlockSpec((1, tile_l, Cin), lambda b, l: (b, l, 0)),
                  pl.BlockSpec((1, Cin, Cout), lambda b, l: (0, 0, 0)),
                  pl.BlockSpec((1, Cout), lambda b, l: (0, 0))],
        out_specs=pl.BlockSpec((1, tile_l, Cout), lambda b, l: (b, l, 0)),
        compiler_params=pltpu.CompilerParams(
            dimension_semantics=("parallel", "parallel")),
        cost_estimate=pl.CostEstimate(flops=2 * B * Lp * Cin * Cout, transcendentals=0,
                                      bytes_accessed=4 * (x.size + B * Lp * Cout + w.size)),
    )(x, w, bias)


# ----------------------------------------------------------------------------
# Parameter init (deterministic, synthetic) — mirrors TCN.__init__ shapes
# ----------------------------------------------------------------------------
def init_tcn_params(key, n_features, blocks, kernel_size):
    def conv_init(key, k, cin, cout):
        kw, kb = jax.random.split(key)
        bound = 1.0 / math.sqrt(cin * k)
        w = jax.random.uniform(kw, (k, cin, cout), jnp.float32, -bound, bound)
        b = jax.random.uniform(kb, (cout,), jnp.float32, -bound, bound)
        return w, b

    params = {"blocks": [], "classifier": None}
    in_ch = n_features
    for _, hidden in enumerate(blocks):
        key, k1, k2, k3 = jax.random.split(key, 4)
        w1, b1 = conv_init(k1, kernel_size, in_ch, hidden)
        w2, b2 = conv_init(k2, kernel_size, hidden, hidden)
        if in_ch != hidden:
            ws, bs = conv_init(k3, 1, in_ch, hidden)
        else:
            ws, bs = None, None
        params["blocks"].append(dict(w1=w1, b1=b1, w2=w2, b2=b2, w_skip=ws, b_skip=bs))
        in_ch = hidden
    key, kc = jax.random.split(key)
    params["classifier"] = conv_init(kc, 1, in_ch, n_features)
    # TODO(synk): the empty-`blocks` classifier variant (pad + Conv1d(kernel_size)) is not
    # implemented; this mirrors the non-empty path used here.
    return params


def _pad_w(w, cin_p, cout_p):
    K, cin, cout = w.shape
    return jnp.pad(w, ((0, 0), (0, cin_p - cin), (0, cout_p - cout)))


def _pad_b(b, cout_p):
    return jnp.pad(b, (0, cout_p - b.shape[0])).reshape(1, cout_p)


# ----------------------------------------------------------------------------
# TCN forward (Pallas path)
# ----------------------------------------------------------------------------
def tcn_forward(params, x_ncl, *, tile_l=256):
    """x_ncl: (B, n_features, L) -> (B, n_features, L), matching torch TCN.forward (eval)."""
    B, C, L = x_ncl.shape
    n_feat = params["classifier"][1].shape[0]

    x = jnp.transpose(x_ncl, (0, 2, 1))                     # (B, L, C) channels-last

    # Static padding: L up to a tile multiple (multiple of 8), channels up to 128 lanes.
    tl = min(tile_l, _round_up(L, 8))
    Lp = _round_up(L, tl)
    Cp = _round_up(C, LANE)
    x = jnp.pad(x, ((0, 0), (0, Lp - L), (0, Cp - C)))

    cin_p = Cp
    for i, blk in enumerate(params["blocks"]):
        d = 2 ** i                                          # static dilation (Python int)
        ch = blk["w1"].shape[2]
        ch_p = _round_up(ch, LANE)
        w1 = _pad_w(blk["w1"], cin_p, ch_p)
        b1 = _pad_b(blk["b1"], ch_p)
        w2 = _pad_w(blk["w2"], ch_p, ch_p)
        b2 = _pad_b(blk["b2"], ch_p)
        if blk["w_skip"] is not None:
            ws = _pad_w(blk["w_skip"], cin_p, ch_p)
            bs = _pad_b(blk["b_skip"], ch_p)
        else:
            ws = bs = None
        x = tcn_block_fused(x, w1, b1, w2, b2, ws, bs, dilation=d, tile_l=tl)
        cin_p = ch_p

    w_c, b_c = params["classifier"]
    out_p = _round_up(n_feat, LANE)
    out = pointwise_conv(x, _pad_w(w_c, cin_p, out_p), _pad_b(b_c, out_p), tile_l=tl)
    out = out[:, :L, :n_feat]                               # drop L / channel padding
    return jnp.transpose(out, (0, 2, 1))                    # back to (B, C, L)


# ----------------------------------------------------------------------------
# Pure-JAX reference (lax.conv) to validate the Pallas kernels
# ----------------------------------------------------------------------------
def _conv1d_ref(x_ncl, w_kio, b, dilation):
    w_oik = jnp.transpose(w_kio, (2, 1, 0))                 # (O, I, K)
    pad = (w_oik.shape[2] - 1) * dilation
    y = jax.lax.conv_general_dilated(
        x_ncl, w_oik, window_strides=(1,), padding=[(pad, 0)],
        rhs_dilation=(dilation,), dimension_numbers=("NCH", "OIH", "NCH"))
    return y + b[None, :, None]


def tcn_forward_ref(params, x_ncl):
    x = x_ncl
    for i, blk in enumerate(params["blocks"]):
        d = 2 ** i
        h = jax.nn.relu(_conv1d_ref(x, blk["w1"], blk["b1"], d))
        h = jax.nn.relu(_conv1d_ref(h, blk["w2"], blk["b2"], d))
        if blk["w_skip"] is not None:
            skip = _conv1d_ref(x, blk["w_skip"], blk["b_skip"], 1)
        else:
            skip = x
        x = h + skip
    w_c, b_c = params["classifier"]
    return _conv1d_ref(x, w_c, b_c, 1)


# ----------------------------------------------------------------------------
if __name__ == "__main__":
    B, n_features, L = 2, 4, 16
    blocks = [8, 16]            # hidden channels per block; dilations = 1, 2
    kernel_size = 3

    key = jax.random.PRNGKey(0)
    key_p, key_x = jax.random.split(key)
    params = init_tcn_params(key_p, n_features, blocks, kernel_size)
    x = jax.random.normal(key_x, (B, n_features, L), jnp.float32)  # torch NCL layout

    y = jax.block_until_ready(jax.jit(tcn_forward)(params, x))
    y_ref = jax.block_until_ready(tcn_forward_ref(params, x))

    assert y.shape == (B, n_features, L), y.shape
    err = float(jnp.max(jnp.abs(y - y_ref)))
    assert jnp.allclose(y, y_ref, atol=1e-4, rtol=1e-4), err

    print("KERNEL_OK")
</pallas_src>

<mosaic_0001>
module attributes {stable_mosaic.version = 11 : i64} {
  func.func @_tcn_block_kernel(%arg0: i32, %arg1: i32, %arg2: memref<1x16x128xf32, #tpu.memory_space<vmem>>, %arg3: memref<3x128x128xf32, #tpu.memory_space<vmem>>, %arg4: memref<1x128xf32, #tpu.memory_space<vmem>>, %arg5: memref<3x128x128xf32, #tpu.memory_space<vmem>>, %arg6: memref<1x128xf32, #tpu.memory_space<vmem>>, %arg7: memref<1x128x128xf32, #tpu.memory_space<vmem>>, %arg8: memref<1x128xf32, #tpu.memory_space<vmem>>, %arg9: memref<1x16x128xf32, #tpu.memory_space<vmem>>, %arg10: memref<2x24x128xf32, #tpu.memory_space<vmem>>, %arg11: memref<2x24x128xf32, #tpu.memory_space<vmem>>) attributes {dimension_semantics = [#tpu.dimension_semantics<parallel>, #tpu.dimension_semantics<arbitrary>], iteration_bounds = array<i64: 2, 1>, scalar_prefetch = 0 : i64, scratch_operands = 2 : i64, tpu.core_type = #tpu.core_type<tc>, window_params = [{transform_indices = @transform_0, window_bounds = array<i64: 1, 16, 128>}, {pipeline_mode = #tpu.pipeline_mode<synchronous>, transform_indices = @transform_1, window_bounds = array<i64: 3, 128, 128>}, {pipeline_mode = #tpu.pipeline_mode<synchronous>, transform_indices = @transform_2, window_bounds = array<i64: 1, 128>}, {pipeline_mode = #tpu.pipeline_mode<synchronous>, transform_indices = @transform_3, window_bounds = array<i64: 3, 128, 128>}, {pipeline_mode = #tpu.pipeline_mode<synchronous>, transform_indices = @transform_4, window_bounds = array<i64: 1, 128>}, {pipeline_mode = #tpu.pipeline_mode<synchronous>, transform_indices = @transform_5, window_bounds = array<i64: 1, 128, 128>}, {pipeline_mode = #tpu.pipeline_mode<synchronous>, transform_indices = @transform_6, window_bounds = array<i64: 1, 128>}, {transform_indices = @transform_7, window_bounds = array<i64: 1, 16, 128>}]} {
    %c0_i32 = arith.constant 0 : i32
    %0 = arith.cmpi eq, %arg1, %c0_i32 : i32
    %1 = arith.extui %0 : i1 to i32
    %c0_i32_0 = arith.constant 0 : i32
    %2 = arith.cmpi ne, %1, %c0_i32_0 : i32
    scf.if %2 {
      %cst_61 = arith.constant 0.000000e+00 : f32
      %91 = vector.broadcast %cst_61 : f32 to vector<8x128xf32>
      %92 = arith.index_cast %arg0 : i32 to index
      %c0_62 = arith.constant 0 : index
      %c0_63 = arith.constant 0 : index
      %93 = vector.load %arg10[%92, %c0_62, %c0_63] : memref<2x24x128xf32, #tpu.memory_space<vmem>>, vector<1x8x128xf32>
      %94 = vector.shape_cast %93 : vector<1x8x128xf32> to vector<8x128xf32>
      %95 = vector.shape_cast %91 : vector<8x128xf32> to vector<1x8x128xf32>
      tpu.vector_store %arg10[%92, %c0_62, %c0_63], %95 {strides = array<i32>} : memref<2x24x128xf32, #tpu.memory_space<vmem>>, vector<1x8x128xf32>,
      %cst_64 = arith.constant 0.000000e+00 : f32
      %96 = vector.broadcast %cst_64 : f32 to vector<8x128xf32>
      %97 = arith.index_cast %arg0 : i32 to index
      %c0_65 = arith.constant 0 : index
      %c0_66 = arith.constant 0 : index
      %98 = vector.load %arg11[%97, %c0_65, %c0_66] : memref<2x24x128xf32, #tpu.memory_space<vmem>>, vector<1x8x128xf32>
      %99 = vector.shape_cast %98 : vector<1x8x128xf32> to vector<8x128xf32>
      %100 = vector.shape_cast %96 : vector<8x128xf32> to vector<1x8x128xf32>
      tpu.vector_store %arg11[%97, %c0_65, %c0_66], %100 {strides = array<i32>} : memref<2x24x128xf32, #tpu.memory_space<vmem>>, vector<1x8x128xf32>,
    } else {
    }
    %c0 = arith.constant 0 : index
    %c0_1 = arith.constant 0 : index
    %c0_2 = arith.constant 0 : index
    %3 = vector.load %arg2[%c0, %c0_1, %c0_2] : memref<1x16x128xf32, #tpu.memory_space<vmem>>, vector<1x16x128xf32>
    %4 = vector.shape_cast %3 : vector<1x16x128xf32> to vector<16x128xf32>
    %5 = arith.index_cast %arg0 : i32 to index
    %c8 = arith.constant 8 : index
    %c0_3 = arith.constant 0 : index
    %6 = vector.load %arg10[%5, %c8, %c0_3] : memref<2x24x128xf32, #tpu.memory_space<vmem>>, vector<1x16x128xf32>
    %7 = vector.shape_cast %6 : vector<1x16x128xf32> to vector<16x128xf32>
    %8 = vector.shape_cast %4 : vector<16x128xf32> to vector<1x16x128xf32>
    tpu.vector_store %arg10[%5, %c8, %c0_3], %8 {strides = array<i32>} : memref<2x24x128xf32, #tpu.memory_space<vmem>>, vector<1x16x128xf32>,
    %cst = arith.constant 0.000000e+00 : f32
    %9 = vector.broadcast %cst : f32 to vector<16x128xf32>
    %10 = arith.index_cast %arg0 : i32 to index
    %c6 = arith.constant 6 : index
    %c0_4 = arith.constant 0 : index
    %11 = vector.load %arg10[%10, %c6, %c0_4] : memref<2x24x128xf32, #tpu.memory_space<vmem>>, vector<1x16x128xf32>
    %12 = vector.shape_cast %11 : vector<1x16x128xf32> to vector<16x128xf32>
    %c0_5 = arith.constant 0 : index
    %c0_6 = arith.constant 0 : index
    %c0_7 = arith.constant 0 : index
    %13 = vector.load %arg3[%c0_5, %c0_6, %c0_7] : memref<3x128x128xf32, #tpu.memory_space<vmem>>, vector<1x128x128xf32>
    %14 = vector.shape_cast %13 : vector<1x128x128xf32> to vector<128x128xf32>
    %cst_8 = arith.constant dense<0.000000e+00> : vector<16x128xf32>
    %15 = tpu.matmul %12, %14, %cst_8 {dimension_numbers = #tpu.dot_dimension_numbers<[1], [0], [0], [1], [0, 0, 1, 1], [], []>} : vector<16x128xf32>, vector<128x128xf32>, vector<16x128xf32> -> vector<16x128xf32>
    %16 = arith.addf %9, %15 : vector<16x128xf32>
    %17 = arith.index_cast %arg0 : i32 to index
    %c7 = arith.constant 7 : index
    %c0_9 = arith.constant 0 : index
    %18 = vector.load %arg10[%17, %c7, %c0_9] : memref<2x24x128xf32, #tpu.memory_space<vmem>>, vector<1x16x128xf32>
    %19 = vector.shape_cast %18 : vector<1x16x128xf32> to vector<16x128xf32>
    %c1 = arith.constant 1 : index
    %c0_10 = arith.constant 0 : index
    %c0_11 = arith.constant 0 : index
    %20 = vector.load %arg3[%c1, %c0_10, %c0_11] : memref<3x128x128xf32, #tpu.memory_space<vmem>>, vector<1x128x128xf32>
    %21 = vector.shape_cast %20 : vector<1x128x128xf32> to vector<128x128xf32>
    %cst_12 = arith.constant dense<0.000000e+00> : vector<16x128xf32>
    %22 = tpu.matmul %19, %21, %cst_12 {dimension_numbers = #tpu.dot_dimension_numbers<[1], [0], [0], [1], [0, 0, 1, 1], [], []>} : vector<16x128xf32>, vector<128x128xf32>, vector<16x128xf32> -> vector<16x128xf32>
    %23 = arith.addf %16, %22 : vector<16x128xf32>
    %24 = arith.index_cast %arg0 : i32 to index
    %c8_13 = arith.constant 8 : index
    %c0_14 = arith.constant 0 : index
    %25 = vector.load %arg10[%24, %c8_13, %c0_14] : memref<2x24x128xf32, #tpu.memory_space<vmem>>, vector<1x16x128xf32>
    %26 = vector.shape_cast %25 : vector<1x16x128xf32> to vector<16x128xf32>
    %c2 = arith.constant 2 : index
    %c0_15 = arith.constant 0 : index
    %c0_16 = arith.constant 0 : index
    %27 = vector.load %arg3[%c2, %c0_15, %c0_16] : memref<3x128x128xf32, #tpu.memory_space<vmem>>, vector<1x128x128xf32>
    %28 = vector.shape_cast %27 : vector<1x128x128xf32> to vector<128x128xf32>
    %cst_17 = arith.constant dense<0.000000e+00> : vector<16x128xf32>
    %29 = tpu.matmul %26, %28, %cst_17 {dimension_numbers = #tpu.dot_dimension_numbers<[1], [0], [0], [1], [0, 0, 1, 1], [], []>} : vector<16x128xf32>, vector<128x128xf32>, vector<16x128xf32> -> vector<16x128xf32>
    %30 = arith.addf %23, %29 : vector<16x128xf32>
    %c0_18 = arith.constant 0 : index
    %c0_19 = arith.constant 0 : index
    %31 = vector.load %arg4[%c0_18, %c0_19] : memref<1x128xf32, #tpu.memory_space<vmem>>, vector<1x128xf32>
    %32 = vector.broadcast %31 : vector<1x128xf32> to vector<16x128xf32>
    %33 = arith.addf %30, %32 : vector<16x128xf32>
    %cst_20 = arith.constant 0.000000e+00 : f32
    %34 = vector.broadcast %cst_20 : f32 to vector<16x128xf32>
    %35 = arith.maximumf %33, %34 : vector<16x128xf32>
    %36 = arith.index_cast %arg0 : i32 to index
    %c8_21 = arith.constant 8 : index
    %c0_22 = arith.constant 0 : index
    %37 = vector.load %arg11[%36, %c8_21, %c0_22] : memref<2x24x128xf32, #tpu.memory_space<vmem>>, vector<1x16x128xf32>
    %38 = vector.shape_cast %37 : vector<1x16x128xf32> to vector<16x128xf32>
    %39 = vector.shape_cast %35 : vector<16x128xf32> to vector<1x16x128xf32>
    tpu.vector_store %arg11[%36, %c8_21, %c0_22], %39 {strides = array<i32>} : memref<2x24x128xf32, #tpu.memory_space<vmem>>, vector<1x16x128xf32>,
    %cst_23 = arith.constant 0.000000e+00 : f32
    %40 = vector.broadcast %cst_23 : f32 to vector<16x128xf32>
    %41 = arith.index_cast %arg0 : i32 to index
    %c6_24 = arith.constant 6 : index
    %c0_25 = arith.constant 0 : index
    %42 = vector.load %arg11[%41, %c6_24, %c0_25] : memref<2x24x128xf32, #tpu.memory_space<vmem>>, vector<1x16x128xf32>
    %43 = vector.shape_cast %42 : vector<1x16x128xf32> to vector<16x128xf32>
    %c0_26 = arith.constant 0 : index
    %c0_27 = arith.constant 0 : index
    %c0_28 = arith.constant 0 : index
    %44 = vector.load %arg5[%c0_26, %c0_27, %c0_28] : memref<3x128x128xf32, #tpu.memory_space<vmem>>, vector<1x128x128xf32>
    %45 = vector.shape_cast %44 : vector<1x128x128xf32> to vector<128x128xf32>
    %cst_29 = arith.constant dense<0.000000e+00> : vector<16x128xf32>
    %46 = tpu.matmul %43, %45, %cst_29 {dimension_numbers = #tpu.dot_dimension_numbers<[1], [0], [0], [1], [0, 0, 1, 1], [], []>} : vector<16x128xf32>, vector<128x128xf32>, vector<16x128xf32> -> vector<16x128xf32>
    %47 = arith.addf %40, %46 : vector<16x128xf32>
    %48 = arith.index_cast %arg0 : i32 to index
    %c7_30 = arith.constant 7 : index
    %c0_31 = arith.constant 0 : index
    %49 = vector.load %arg11[%48, %c7_30, %c0_31] : memref<2x24x128xf32, #tpu.memory_space<vmem>>, vector<1x16x128xf32>
    %50 = vector.shape_cast %49 : vector<1x16x128xf32> to vector<16x128xf32>
    %c1_32 = arith.constant 1 : index
    %c0_33 = arith.constant 0 : index
    %c0_34 = arith.constant 0 : index
    %51 = vector.load %arg5[%c1_32, %c0_33, %c0_34] : memref<3x128x128xf32, #tpu.memory_space<vmem>>, vector<1x128x128xf32>
    %52 = vector.shape_cast %51 : vector<1x128x128xf32> to vector<128x128xf32>
    %cst_35 = arith.constant dense<0.000000e+00> : vector<16x128xf32>
    %53 = tpu.matmul %50, %52, %cst_35 {dimension_numbers = #tpu.dot_dimension_numbers<[1], [0], [0], [1], [0, 0, 1, 1], [], []>} : vector<16x128xf32>, vector<128x128xf32>, vector<16x128xf32> -> vector<16x128xf32>
    %54 = arith.addf %47, %53 : vector<16x128xf32>
    %55 = arith.index_cast %arg0 : i32 to index
    %c8_36 = arith.constant 8 : index
    %c0_37 = arith.constant 0 : index
    %56 = vector.load %arg11[%55, %c8_36, %c0_37] : memref<2x24x128xf32, #tpu.memory_space<vmem>>, vector<1x16x128xf32>
    %57 = vector.shape_cast %56 : vector<1x16x128xf32> to vector<16x128xf32>
    %c2_38 = arith.constant 2 : index
    %c0_39 = arith.constant 0 : index
    %c0_40 = arith.constant 0 : index
    %58 = vector.load %arg5[%c2_38, %c0_39, %c0_40] : memref<3x128x128xf32, #tpu.memory_space<vmem>>, vector<1x128x128xf32>
    %59 = vector.shape_cast %58 : vector<1x128x128xf32> to vector<128x128xf32>
    %cst_41 = arith.constant dense<0.000000e+00> : vector<16x128xf32>
    %60 = tpu.matmul %57, %59, %cst_41 {dimension_numbers = #tpu.dot_dimension_numbers<[1], [0], [0], [1], [0, 0, 1, 1], [], []>} : vector<16x128xf32>, vector<128x128xf32>, vector<16x128xf32> -> vector<16x128xf32>
    %61 = arith.addf %54, %60 : vector<16x128xf32>
    %c0_42 = arith.constant 0 : index
    %c0_43 = arith.constant 0 : index
    %62 = vector.load %arg6[%c0_42, %c0_43] : memref<1x128xf32, #tpu.memory_space<vmem>>, vector<1x128xf32>
    %63 = vector.broadcast %62 : vector<1x128xf32> to vector<16x128xf32>
    %64 = arith.addf %61, %63 : vector<16x128xf32>
    %cst_44 = arith.constant 0.000000e+00 : f32
    %65 = vector.broadcast %cst_44 : f32 to vector<16x128xf32>
    %66 = arith.maximumf %64, %65 : vector<16x128xf32>
    %c0_45 = arith.constant 0 : index
    %c0_46 = arith.constant 0 : index
    %c0_47 = arith.constant 0 : index
    %67 = vector.load %arg7[%c0_45, %c0_46, %c0_47] : memref<1x128x128xf32, #tpu.memory_space<vmem>>, vector<1x128x128xf32>
    %68 = vector.shape_cast %67 : vector<1x128x128xf32> to vector<128x128xf32>
    %cst_48 = arith.constant dense<0.000000e+00> : vector<16x128xf32>
    %69 = tpu.matmul %4, %68, %cst_48 {dimension_numbers = #tpu.dot_dimension_numbers<[1], [0], [0], [1], [0, 0, 1, 1], [], []>} : vector<16x128xf32>, vector<128x128xf32>, vector<16x128xf32> -> vector<16x128xf32>
    %c0_49 = arith.constant 0 : index
    %c0_50 = arith.constant 0 : index
    %70 = vector.load %arg8[%c0_49, %c0_50] : memref<1x128xf32, #tpu.memory_space<vmem>>, vector<1x128xf32>
    %71 = vector.broadcast %70 : vector<1x128xf32> to vector<16x128xf32>
    %72 = arith.addf %69, %71 : vector<16x128xf32>
    %73 = arith.addf %66, %72 : vector<16x128xf32>
    %c0_51 = arith.constant 0 : index
    %c0_52 = arith.constant 0 : index
    %c0_53 = arith.constant 0 : index
    %74 = vector.load %arg9[%c0_51, %c0_52, %c0_53] : memref<1x16x128xf32, #tpu.memory_space<vmem>>, vector<1x16x128xf32>
    %75 = vector.shape_cast %74 : vector<1x16x128xf32> to vector<16x128xf32>
    %76 = vector.shape_cast %73 : vector<16x128xf32> to vector<1x16x128xf32>
    tpu.vector_store %arg9[%c0_51, %c0_52, %c0_53], %76 {strides = array<i32>} : memref<1x16x128xf32, #tpu.memory_space<vmem>>, vector<1x16x128xf32>,
    %77 = arith.index_cast %arg0 : i32 to index
    %c16 = arith.constant 16 : index
    %c0_54 = arith.constant 0 : index
    %78 = vector.load %arg10[%77, %c16, %c0_54] : memref<2x24x128xf32, #tpu.memory_space<vmem>>, vector<1x8x128xf32>
    %79 = vector.shape_cast %78 : vector<1x8x128xf32> to vector<8x128xf32>
    %80 = arith.index_cast %arg0 : i32 to index
    %c0_55 = arith.constant 0 : index
    %c0_56 = arith.constant 0 : index
    %81 = vector.load %arg10[%80, %c0_55, %c0_56] : memref<2x24x128xf32, #tpu.memory_space<vmem>>, vector<1x8x128xf32>
    %82 = vector.shape_cast %81 : vector<1x8x128xf32> to vector<8x128xf32>
    %83 = vector.shape_cast %79 : vector<8x128xf32> to vector<1x8x128xf32>
    tpu.vector_store %arg10[%80, %c0_55, %c0_56], %83 {strides = array<i32>} : memref<2x24x128xf32, #tpu.memory_space<vmem>>, vector<1x8x128xf32>,
    %84 = arith.index_cast %arg0 : i32 to index
    %c16_57 = arith.constant 16 : index
    %c0_58 = arith.constant 0 : index
    %85 = vector.load %arg11[%84, %c16_57, %c0_58] : memref<2x24x128xf32, #tpu.memory_space<vmem>>, vector<1x8x128xf32>
    %86 = vector.shape_cast %85 : vector<1x8x128xf32> to vector<8x128xf32>
    %87 = arith.index_cast %arg0 : i32 to index
    %c0_59 = arith.constant 0 : index
    %c0_60 = arith.constant 0 : index
    %88 = vector.load %arg11[%87, %c0_59, %c0_60] : memref<2x24x128xf32, #tpu.memory_space<vmem>>, vector<1x8x128xf32>
    %89 = vector.shape_cast %88 : vector<1x8x128xf32> to vector<8x128xf32>
    %90 = vector.shape_cast %86 : vector<8x128xf32> to vector<1x8x128xf32>
    tpu.vector_store %arg11[%87, %c0_59, %c0_60], %90 {strides = array<i32>} : memref<2x24x128xf32, #tpu.memory_space<vmem>>, vector<1x8x128xf32>,
    return
  }
  func.func @transform_0(%arg0: i32, %arg1: i32) -> (i32, i32, i32) {
    %c0_i32 = arith.constant 0 : i32
    %c0_i32_0 = arith.constant 0 : i32
    return %arg0, %arg1, %c0_i32 : i32, i32, i32
  }
  func.func @transform_1(%arg0: i32, %arg1: i32) -> (i32, i32, i32) {
    %c0_i32 = arith.constant 0 : i32
    %c0_i32_0 = arith.constant 0 : i32
    %c0_i32_1 = arith.constant 0 : i32
    %c0_i32_2 = arith.constant 0 : i32
    return %c0_i32, %c0_i32_0, %c0_i32_1 : i32, i32, i32
  }
  func.func @transform_2(%arg0: i32, %arg1: i32) -> (i32, i32) {
    %c0_i32 = arith.constant 0 : i32
    %c0_i32_0 = arith.constant 0 : i32
    %c0_i32_1 = arith.constant 0 : i32
    return %c0_i32, %c0_i32_0 : i32, i32
  }
  func.func @transform_3(%arg0: i32, %arg1: i32) -> (i32, i32, i32) {
    %c0_i32 = arith.constant 0 : i32
    %c0_i32_0 = arith.constant 0 : i32
    %c0_i32_1 = arith.constant 0 : i32
    %c0_i32_2 = arith.constant 0 : i32
    return %c0_i32, %c0_i32_0, %c0_i32_1 : i32, i32, i32
  }
  func.func @transform_4(%arg0: i32, %arg1: i32) -> (i32, i32) {
    %c0_i32 = arith.constant 0 : i32
    %c0_i32_0 = arith.constant 0 : i32
    %c0_i32_1 = arith.constant 0 : i32
    return %c0_i32, %c0_i32_0 : i32, i32
  }
  func.func @transform_5(%arg0: i32, %arg1: i32) -> (i32, i32, i32) {
    %c0_i32 = arith.constant 0 : i32
    %c0_i32_0 = arith.constant 0 : i32
    %c0_i32_1 = arith.constant 0 : i32
    %c0_i32_2 = arith.constant 0 : i32
    return %c0_i32, %c0_i32_0, %c0_i32_1 : i32, i32, i32
  }
  func.func @transform_6(%arg0: i32, %arg1: i32) -> (i32, i32) {
    %c0_i32 = arith.constant 0 : i32
    %c0_i32_0 = arith.constant 0 : i32
    %c0_i32_1 = arith.constant 0 : i32
    return %c0_i32, %c0_i32_0 : i32, i32
  }
  func.func @transform_7(%arg0: i32, %arg1: i32) -> (i32, i32, i32) {
    %c0_i32 = arith.constant 0 : i32
    %c0_i32_0 = arith.constant 0 : i32
    return %arg0, %arg1, %c0_i32 : i32, i32, i32
  }
}

module attributes {stable_mosaic.version = 11 : i64} {
  func.func @_tcn_block_kernel(%arg0: i32, %arg1: i32, %arg2: memref<1x16x128xf32, #tpu.memory_space<vmem>>, %arg3: memref<3x128x128xf32, #tpu.memory_space<vmem>>, %arg4: memref<1x128xf32, #tpu.memory_space<vmem>>, %arg5: memref<3x128x128xf32, #tpu.memory_space<vmem>>, %arg6: memref<1x128xf32, #tpu.memory_space<vmem>>, %arg7: memref<1x128x128xf32, #tpu.memory_space<vmem>>, %arg8: memref<1x128xf32, #tpu.memory_space<vmem>>, %arg9: memref<1x16x128xf32, #tpu.memory_space<vmem>>, %arg10: memref<2x24x128xf32, #tpu.memory_space<vmem>>, %arg11: memref<2x24x128xf32, #tpu.memory_space<vmem>>) attributes {dimension_semantics = [#tpu.dimension_semantics<parallel>, #tpu.dimension_semantics<arbitrary>], iteration_bounds = array<i64: 2, 1>, scalar_prefetch = 0 : i64, scratch_operands = 2 : i64, tpu.core_type = #tpu.core_type<tc>, window_params = [{transform_indices = @transform_0, window_bounds = array<i64: 1, 16, 128>}, {pipeline_mode = #tpu.pipeline_mode<synchronous>, transform_indices = @transform_1, window_bounds = array<i64: 3, 128, 128>}, {pipeline_mode = #tpu.pipeline_mode<synchronous>, transform_indices = @transform_2, window_bounds = array<i64: 1, 128>}, {pipeline_mode = #tpu.pipeline_mode<synchronous>, transform_indices = @transform_3, window_bounds = array<i64: 3, 128, 128>}, {pipeline_mode = #tpu.pipeline_mode<synchronous>, transform_indices = @transform_4, window_bounds = array<i64: 1, 128>}, {pipeline_mode = #tpu.pipeline_mode<synchronous>, transform_indices = @transform_5, window_bounds = array<i64: 1, 128, 128>}, {pipeline_mode = #tpu.pipeline_mode<synchronous>, transform_indices = @transform_6, window_bounds = array<i64: 1, 128>}, {transform_indices = @transform_7, window_bounds = array<i64: 1, 16, 128>}]} {
    %c0_i32 = arith.constant 0 : i32
    %0 = arith.cmpi eq, %arg1, %c0_i32 : i32
    %1 = arith.extui %0 : i1 to i32
    %c0_i32_0 = arith.constant 0 : i32
    %2 = arith.cmpi ne, %1, %c0_i32_0 : i32
    scf.if %2 {
      %cst_61 = arith.constant 0.000000e+00 : f32
      %91 = vector.broadcast %cst_61 : f32 to vector<8x128xf32>
      %92 = arith.index_cast %arg0 : i32 to index
      %c0_62 = arith.constant 0 : index
      %c0_63 = arith.constant 0 : index
      %93 = vector.load %arg10[%92, %c0_62, %c0_63] : memref<2x24x128xf32, #tpu.memory_space<vmem>>, vector<1x8x128xf32>
      %94 = vector.shape_cast %93 : vector<1x8x128xf32> to vector<8x128xf32>
      %95 = vector.shape_cast %91 : vector<8x128xf32> to vector<1x8x128xf32>
      tpu.vector_store %arg10[%92, %c0_62, %c0_63], %95 {strides = array<i32>} : memref<2x24x128xf32, #tpu.memory_space<vmem>>, vector<1x8x128xf32>,
      %cst_64 = arith.constant 0.000000e+00 : f32
      %96 = vector.broadcast %cst_64 : f32 to vector<8x128xf32>
      %97 = arith.index_cast %arg0 : i32 to index
      %c0_65 = arith.constant 0 : index
      %c0_66 = arith.constant 0 : index
      %98 = vector.load %arg11[%97, %c0_65, %c0_66] : memref<2x24x128xf32, #tpu.memory_space<vmem>>, vector<1x8x128xf32>
      %99 = vector.shape_cast %98 : vector<1x8x128xf32> to vector<8x128xf32>
      %100 = vector.shape_cast %96 : vector<8x128xf32> to vector<1x8x128xf32>
      tpu.vector_store %arg11[%97, %c0_65, %c0_66], %100 {strides = array<i32>} : memref<2x24x128xf32, #tpu.memory_space<vmem>>, vector<1x8x128xf32>,
    } else {
    }
    %c0 = arith.constant 0 : index
    %c0_1 = arith.constant 0 : index
    %c0_2 = arith.constant 0 : index
    %3 = vector.load %arg2[%c0, %c0_1, %c0_2] : memref<1x16x128xf32, #tpu.memory_space<vmem>>, vector<1x16x128xf32>
    %4 = vector.shape_cast %3 : vector<1x16x128xf32> to vector<16x128xf32>
    %5 = arith.index_cast %arg0 : i32 to index
    %c8 = arith.constant 8 : index
    %c0_3 = arith.constant 0 : index
    %6 = vector.load %arg10[%5, %c8, %c0_3] : memref<2x24x128xf32, #tpu.memory_space<vmem>>, vector<1x16x128xf32>
    %7 = vector.shape_cast %6 : vector<1x16x128xf32> to vector<16x128xf32>
    %8 = vector.shape_cast %4 : vector<16x128xf32> to vector<1x16x128xf32>
    tpu.vector_store %arg10[%5, %c8, %c0_3], %8 {strides = array<i32>} : memref<2x24x128xf32, #tpu.memory_space<vmem>>, vector<1x16x128xf32>,
    %cst = arith.constant 0.000000e+00 : f32
    %9 = vector.broadcast %cst : f32 to vector<16x128xf32>
    %10 = arith.index_cast %arg0 : i32 to index
    %c4 = arith.constant 4 : index
    %c0_4 = arith.constant 0 : index
    %11 = vector.load %arg10[%10, %c4, %c0_4] : memref<2x24x128xf32, #tpu.memory_space<vmem>>, vector<1x16x128xf32>
    %12 = vector.shape_cast %11 : vector<1x16x128xf32> to vector<16x128xf32>
    %c0_5 = arith.constant 0 : index
    %c0_6 = arith.constant 0 : index
    %c0_7 = arith.constant 0 : index
    %13 = vector.load %arg3[%c0_5, %c0_6, %c0_7] : memref<3x128x128xf32, #tpu.memory_space<vmem>>, vector<1x128x128xf32>
    %14 = vector.shape_cast %13 : vector<1x128x128xf32> to vector<128x128xf32>
    %cst_8 = arith.constant dense<0.000000e+00> : vector<16x128xf32>
    %15 = tpu.matmul %12, %14, %cst_8 {dimension_numbers = #tpu.dot_dimension_numbers<[1], [0], [0], [1], [0, 0, 1, 1], [], []>} : vector<16x128xf32>, vector<128x128xf32>, vector<16x128xf32> -> vector<16x128xf32>
    %16 = arith.addf %9, %15 : vector<16x128xf32>
    %17 = arith.index_cast %arg0 : i32 to index
    %c6 = arith.constant 6 : index
    %c0_9 = arith.constant 0 : index
    %18 = vector.load %arg10[%17, %c6, %c0_9] : memref<2x24x128xf32, #tpu.memory_space<vmem>>, vector<1x16x128xf32>
    %19 = vector.shape_cast %18 : vector<1x16x128xf32> to vector<16x128xf32>
    %c1 = arith.constant 1 : index
    %c0_10 = arith.constant 0 : index
    %c0_11 = arith.constant 0 : index
    %20 = vector.load %arg3[%c1, %c0_10, %c0_11] : memref<3x128x128xf32, #tpu.memory_space<vmem>>, vector<1x128x128xf32>
    %21 = vector.shape_cast %20 : vector<1x128x128xf32> to vector<128x128xf32>
    %cst_12 = arith.constant dense<0.000000e+00> : vector<16x128xf32>
    %22 = tpu.matmul %19, %21, %cst_12 {dimension_numbers = #tpu.dot_dimension_numbers<[1], [0], [0], [1], [0, 0, 1, 1], [], []>} : vector<16x128xf32>, vector<128x128xf32>, vector<16x128xf32> -> vector<16x128xf32>
    %23 = arith.addf %16, %22 : vector<16x128xf32>
    %24 = arith.index_cast %arg0 : i32 to index
    %c8_13 = arith.constant 8 : index
    %c0_14 = arith.constant 0 : index
    %25 = vector.load %arg10[%24, %c8_13, %c0_14] : memref<2x24x128xf32, #tpu.memory_space<vmem>>, vector<1x16x128xf32>
    %26 = vector.shape_cast %25 : vector<1x16x128xf32> to vector<16x128xf32>
    %c2 = arith.constant 2 : index
    %c0_15 = arith.constant 0 : index
    %c0_16 = arith.constant 0 : index
    %27 = vector.load %arg3[%c2, %c0_15, %c0_16] : memref<3x128x128xf32, #tpu.memory_space<vmem>>, vector<1x128x128xf32>
    %28 = vector.shape_cast %27 : vector<1x128x128xf32> to vector<128x128xf32>
    %cst_17 = arith.constant dense<0.000000e+00> : vector<16x128xf32>
    %29 = tpu.matmul %26, %28, %cst_17 {dimension_numbers = #tpu.dot_dimension_numbers<[1], [0], [0], [1], [0, 0, 1, 1], [], []>} : vector<16x128xf32>, vector<128x128xf32>, vector<16x128xf32> -> vector<16x128xf32>
    %30 = arith.addf %23, %29 : vector<16x128xf32>
    %c0_18 = arith.constant 0 : index
    %c0_19 = arith.constant 0 : index
    %31 = vector.load %arg4[%c0_18, %c0_19] : memref<1x128xf32, #tpu.memory_space<vmem>>, vector<1x128xf32>
    %32 = vector.broadcast %31 : vector<1x128xf32> to vector<16x128xf32>
    %33 = arith.addf %30, %32 : vector<16x128xf32>
    %cst_20 = arith.constant 0.000000e+00 : f32
    %34 = vector.broadcast %cst_20 : f32 to vector<16x128xf32>
    %35 = arith.maximumf %33, %34 : vector<16x128xf32>
    %36 = arith.index_cast %arg0 : i32 to index
    %c8_21 = arith.constant 8 : index
    %c0_22 = arith.constant 0 : index
    %37 = vector.load %arg11[%36, %c8_21, %c0_22] : memref<2x24x128xf32, #tpu.memory_space<vmem>>, vector<1x16x128xf32>
    %38 = vector.shape_cast %37 : vector<1x16x128xf32> to vector<16x128xf32>
    %39 = vector.shape_cast %35 : vector<16x128xf32> to vector<1x16x128xf32>
    tpu.vector_store %arg11[%36, %c8_21, %c0_22], %39 {strides = array<i32>} : memref<2x24x128xf32, #tpu.memory_space<vmem>>, vector<1x16x128xf32>,
    %cst_23 = arith.constant 0.000000e+00 : f32
    %40 = vector.broadcast %cst_23 : f32 to vector<16x128xf32>
    %41 = arith.index_cast %arg0 : i32 to index
    %c4_24 = arith.constant 4 : index
    %c0_25 = arith.constant 0 : index
    %42 = vector.load %arg11[%41, %c4_24, %c0_25] : memref<2x24x128xf32, #tpu.memory_space<vmem>>, vector<1x16x128xf32>
    %43 = vector.shape_cast %42 : vector<1x16x128xf32> to vector<16x128xf32>
    %c0_26 = arith.constant 0 : index
    %c0_27 = arith.constant 0 : index
    %c0_28 = arith.constant 0 : index
    %44 = vector.load %arg5[%c0_26, %c0_27, %c0_28] : memref<3x128x128xf32, #tpu.memory_space<vmem>>, vector<1x128x128xf32>
    %45 = vector.shape_cast %44 : vector<1x128x128xf32> to vector<128x128xf32>
    %cst_29 = arith.constant dense<0.000000e+00> : vector<16x128xf32>
    %46 = tpu.matmul %43, %45, %cst_29 {dimension_numbers = #tpu.dot_dimension_numbers<[1], [0], [0], [1], [0, 0, 1, 1], [], []>} : vector<16x128xf32>, vector<128x128xf32>, vector<16x128xf32> -> vector<16x128xf32>
    %47 = arith.addf %40, %46 : vector<16x128xf32>
    %48 = arith.index_cast %arg0 : i32 to index
    %c6_30 = arith.constant 6 : index
    %c0_31 = arith.constant 0 : index
    %49 = vector.load %arg11[%48, %c6_30, %c0_31] : memref<2x24x128xf32, #tpu.memory_space<vmem>>, vector<1x16x128xf32>
    %50 = vector.shape_cast %49 : vector<1x16x128xf32> to vector<16x128xf32>
    %c1_32 = arith.constant 1 : index
    %c0_33 = arith.constant 0 : index
    %c0_34 = arith.constant 0 : index
    %51 = vector.load %arg5[%c1_32, %c0_33, %c0_34] : memref<3x128x128xf32, #tpu.memory_space<vmem>>, vector<1x128x128xf32>
    %52 = vector.shape_cast %51 : vector<1x128x128xf32> to vector<128x128xf32>
    %cst_35 = arith.constant dense<0.000000e+00> : vector<16x128xf32>
    %53 = tpu.matmul %50, %52, %cst_35 {dimension_numbers = #tpu.dot_dimension_numbers<[1], [0], [0], [1], [0, 0, 1, 1], [], []>} : vector<16x128xf32>, vector<128x128xf32>, vector<16x128xf32> -> vector<16x128xf32>
    %54 = arith.addf %47, %53 : vector<16x128xf32>
    %55 = arith.index_cast %arg0 : i32 to index
    %c8_36 = arith.constant 8 : index
    %c0_37 = arith.constant 0 : index
    %56 = vector.load %arg11[%55, %c8_36, %c0_37] : memref<2x24x128xf32, #tpu.memory_space<vmem>>, vector<1x16x128xf32>
    %57 = vector.shape_cast %56 : vector<1x16x128xf32> to vector<16x128xf32>
    %c2_38 = arith.constant 2 : index
    %c0_39 = arith.constant 0 : index
    %c0_40 = arith.constant 0 : index
    %58 = vector.load %arg5[%c2_38, %c0_39, %c0_40] : memref<3x128x128xf32, #tpu.memory_space<vmem>>, vector<1x128x128xf32>
    %59 = vector.shape_cast %58 : vector<1x128x128xf32> to vector<128x128xf32>
    %cst_41 = arith.constant dense<0.000000e+00> : vector<16x128xf32>
    %60 = tpu.matmul %57, %59, %cst_41 {dimension_numbers = #tpu.dot_dimension_numbers<[1], [0], [0], [1], [0, 0, 1, 1], [], []>} : vector<16x128xf32>, vector<128x128xf32>, vector<16x128xf32> -> vector<16x128xf32>
    %61 = arith.addf %54, %60 : vector<16x128xf32>
    %c0_42 = arith.constant 0 : index
    %c0_43 = arith.constant 0 : index
    %62 = vector.load %arg6[%c0_42, %c0_43] : memref<1x128xf32, #tpu.memory_space<vmem>>, vector<1x128xf32>
    %63 = vector.broadcast %62 : vector<1x128xf32> to vector<16x128xf32>
    %64 = arith.addf %61, %63 : vector<16x128xf32>
    %cst_44 = arith.constant 0.000000e+00 : f32
    %65 = vector.broadcast %cst_44 : f32 to vector<16x128xf32>
    %66 = arith.maximumf %64, %65 : vector<16x128xf32>
    %c0_45 = arith.constant 0 : index
    %c0_46 = arith.constant 0 : index
    %c0_47 = arith.constant 0 : index
    %67 = vector.load %arg7[%c0_45, %c0_46, %c0_47] : memref<1x128x128xf32, #tpu.memory_space<vmem>>, vector<1x128x128xf32>
    %68 = vector.shape_cast %67 : vector<1x128x128xf32> to vector<128x128xf32>
    %cst_48 = arith.constant dense<0.000000e+00> : vector<16x128xf32>
    %69 = tpu.matmul %4, %68, %cst_48 {dimension_numbers = #tpu.dot_dimension_numbers<[1], [0], [0], [1], [0, 0, 1, 1], [], []>} : vector<16x128xf32>, vector<128x128xf32>, vector<16x128xf32> -> vector<16x128xf32>
    %c0_49 = arith.constant 0 : index
    %c0_50 = arith.constant 0 : index
    %70 = vector.load %arg8[%c0_49, %c0_50] : memref<1x128xf32, #tpu.memory_space<vmem>>, vector<1x128xf32>
    %71 = vector.broadcast %70 : vector<1x128xf32> to vector<16x128xf32>
    %72 = arith.addf %69, %71 : vector<16x128xf32>
    %73 = arith.addf %66, %72 : vector<16x128xf32>
    %c0_51 = arith.constant 0 : index
    %c0_52 = arith.constant 0 : index
    %c0_53 = arith.constant 0 : index
    %74 = vector.load %arg9[%c0_51, %c0_52, %c0_53] : memref<1x16x128xf32, #tpu.memory_space<vmem>>, vector<1x16x128xf32>
    %75 = vector.shape_cast %74 : vector<1x16x128xf32> to vector<16x128xf32>
    %76 = vector.shape_cast %73 : vector<16x128xf32> to vector<1x16x128xf32>
    tpu.vector_store %arg9[%c0_51, %c0_52, %c0_53], %76 {strides = array<i32>} : memref<1x16x128xf32, #tpu.memory_space<vmem>>, vector<1x16x128xf32>,
    %77 = arith.index_cast %arg0 : i32 to index
    %c16 = arith.constant 16 : index
    %c0_54 = arith.constant 0 : index
    %78 = vector.load %arg10[%77, %c16, %c0_54] : memref<2x24x128xf32, #tpu.memory_space<vmem>>, vector<1x8x128xf32>
    %79 = vector.shape_cast %78 : vector<1x8x128xf32> to vector<8x128xf32>
    %80 = arith.index_cast %arg0 : i32 to index
    %c0_55 = arith.constant 0 : index
    %c0_56 = arith.constant 0 : index
    %81 = vector.load %arg10[%80, %c0_55, %c0_56] : memref<2x24x128xf32, #tpu.memory_space<vmem>>, vector<1x8x128xf32>
    %82 = vector.shape_cast %81 : vector<1x8x128xf32> to vector<8x128xf32>
    %83 = vector.shape_cast %79 : vector<8x128xf32> to vector<1x8x128xf32>
    tpu.vector_store %arg10[%80, %c0_55, %c0_56], %83 {strides = array<i32>} : memref<2x24x128xf32, #tpu.memory_space<vmem>>, vector<1x8x128xf32>,
    %84 = arith.index_cast %arg0 : i32 to index
    %c16_57 = arith.constant 16 : index
    %c0_58 = arith.constant 0 : index
    %85 = vector.load %arg11[%84, %c16_57, %c0_58] : memref<2x24x128xf32, #tpu.memory_space<vmem>>, vector<1x8x128xf32>
    %86 = vector.shape_cast %85 : vector<1x8x128xf32> to vector<8x128xf32>
    %87 = arith.index_cast %arg0 : i32 to index
    %c0_59 = arith.constant 0 : index
    %c0_60 = arith.constant 0 : index
    %88 = vector.load %arg11[%87, %c0_59, %c0_60] : memref<2x24x128xf32, #tpu.memory_space<vmem>>, vector<1x8x128xf32>
    %89 = vector.shape_cast %88 : vector<1x8x128xf32> to vector<8x128xf32>
    %90 = vector.shape_cast %86 : vector<8x128xf32> to vector<1x8x128xf32>
    tpu.vector_store %arg11[%87, %c0_59, %c0_60], %90 {strides = array<i32>} : memref<2x24x128xf32, #tpu.memory_space<vmem>>, vector<1x8x128xf32>,
    return
  }
  func.func @transform_0(%arg0: i32, %arg1: i32) -> (i32, i32, i32) {
    %c0_i32 = arith.constant 0 : i32
    %c0_i32_0 = arith.constant 0 : i32
    return %arg0, %arg1, %c0_i32 : i32, i32, i32
  }
  func.func @transform_1(%arg0: i32, %arg1: i32) -> (i32, i32, i32) {
    %c0_i32 = arith.constant 0 : i32
    %c0_i32_0 = arith.constant 0 : i32
    %c0_i32_1 = arith.constant 0 : i32
    %c0_i32_2 = arith.constant 0 : i32
    return %c0_i32, %c0_i32_0, %c0_i32_1 : i32, i32, i32
  }
  func.func @transform_2(%arg0: i32, %arg1: i32) -> (i32, i32) {
    %c0_i32 = arith.constant 0 : i32
    %c0_i32_0 = arith.constant 0 : i32
    %c0_i32_1 = arith.constant 0 : i32
    return %c0_i32, %c0_i32_0 : i32, i32
  }
  func.func @transform_3(%arg0: i32, %arg1: i32) -> (i32, i32, i32) {
    %c0_i32 = arith.constant 0 : i32
    %c0_i32_0 = arith.constant 0 : i32
    %c0_i32_1 = arith.constant 0 : i32
    %c0_i32_2 = arith.constant 0 : i32
    return %c0_i32, %c0_i32_0, %c0_i32_1 : i32, i32, i32
  }
  func.func @transform_4(%arg0: i32, %arg1: i32) -> (i32, i32) {
    %c0_i32 = arith.constant 0 : i32
    %c0_i32_0 = arith.constant 0 : i32
    %c0_i32_1 = arith.constant 0 : i32
    return %c0_i32, %c0_i32_0 : i32, i32
  }
  func.func @transform_5(%arg0: i32, %arg1: i32) -> (i32, i32, i32) {
    %c0_i32 = arith.constant 0 : i32
    %c0_i32_0 = arith.constant 0 : i32
    %c0_i32_1 = arith.constant 0 : i32
    %c0_i32_2 = arith.constant 0 : i32
    return %c0_i32, %c0_i32_0, %c0_i32_1 : i32, i32, i32
  }
  func.func @transform_6(%arg0: i32, %arg1: i32) -> (i32, i32) {
    %c0_i32 = arith.constant 0 : i32
    %c0_i32_0 = arith.constant 0 : i32
    %c0_i32_1 = arith.constant 0 : i32
    return %c0_i32, %c0_i32_0 : i32, i32
  }
  func.func @transform_7(%arg0: i32, %arg1: i32) -> (i32, i32, i32) {
    %c0_i32 = arith.constant 0 : i32
    %c0_i32_0 = arith.constant 0 : i32
    return %arg0, %arg1, %c0_i32 : i32, i32, i32
  }
}

module attributes {stable_mosaic.version = 11 : i64} {
  func.func @_pointwise_conv_kernel(%arg0: i32, %arg1: i32, %arg2: memref<1x16x128xf32, #tpu.memory_space<vmem>>, %arg3: memref<1x128x128xf32, #tpu.memory_space<vmem>>, %arg4: memref<1x128xf32, #tpu.memory_space<vmem>>, %arg5: memref<1x16x128xf32, #tpu.memory_space<vmem>>) attributes {dimension_semantics = [#tpu.dimension_semantics<parallel>, #tpu.dimension_semantics<parallel>], iteration_bounds = array<i64: 2, 1>, scalar_prefetch = 0 : i64, scratch_operands = 0 : i64, tpu.core_type = #tpu.core_type<tc>, window_params = [{transform_indices = @transform_0, window_bounds = array<i64: 1, 16, 128>}, {pipeline_mode = #tpu.pipeline_mode<synchronous>, transform_indices = @transform_1, window_bounds = array<i64: 1, 128, 128>}, {pipeline_mode = #tpu.pipeline_mode<synchronous>, transform_indices = @transform_2, window_bounds = array<i64: 1, 128>}, {transform_indices = @transform_3, window_bounds = array<i64: 1, 16, 128>}]} {
    %c0 = arith.constant 0 : index
    %c0_0 = arith.constant 0 : index
    %c0_1 = arith.constant 0 : index
    %0 = vector.load %arg2[%c0, %c0_0, %c0_1] : memref<1x16x128xf32, #tpu.memory_space<vmem>>, vector<1x16x128xf32>
    %1 = vector.shape_cast %0 : vector<1x16x128xf32> to vector<16x128xf32>
    %c0_2 = arith.constant 0 : index
    %c0_3 = arith.constant 0 : index
    %c0_4 = arith.constant 0 : index
    %2 = vector.load %arg3[%c0_2, %c0_3, %c0_4] : memref<1x128x128xf32, #tpu.memory_space<vmem>>, vector<1x128x128xf32>
    %3 = vector.shape_cast %2 : vector<1x128x128xf32> to vector<128x128xf32>
    %cst = arith.constant dense<0.000000e+00> : vector<16x128xf32>
    %4 = tpu.matmul %1, %3, %cst {dimension_numbers = #tpu.dot_dimension_numbers<[1], [0], [0], [1], [0, 0, 1, 1], [], []>} : vector<16x128xf32>, vector<128x128xf32>, vector<16x128xf32> -> vector<16x128xf32>
    %c0_5 = arith.constant 0 : index
    %c0_6 = arith.constant 0 : index
    %5 = vector.load %arg4[%c0_5, %c0_6] : memref<1x128xf32, #tpu.memory_space<vmem>>, vector<1x128xf32>
    %6 = vector.broadcast %5 : vector<1x128xf32> to vector<16x128xf32>
    %7 = arith.addf %4, %6 : vector<16x128xf32>
    %c0_7 = arith.constant 0 : index
    %c0_8 = arith.constant 0 : index
    %c0_9 = arith.constant 0 : index
    %8 = vector.load %arg5[%c0_7, %c0_8, %c0_9] : memref<1x16x128xf32, #tpu.memory_space<vmem>>, vector<1x16x128xf32>
    %9 = vector.shape_cast %8 : vector<1x16x128xf32> to vector<16x128xf32>
    %10 = vector.shape_cast %7 : vector<16x128xf32> to vector<1x16x128xf32>
    tpu.vector_store %arg5[%c0_7, %c0_8, %c0_9], %10 {strides = array<i32>} : memref<1x16x128xf32, #tpu.memory_space<vmem>>, vector<1x16x128xf32>,
    return
  }
  func.func @transform_0(%arg0: i32, %arg1: i32) -> (i32, i32, i32) {
    %c0_i32 = arith.constant 0 : i32
    %c0_i32_0 = arith.constant 0 : i32
    return %arg0, %arg1, %c0_i32 : i32, i32, i32
  }
  func.func @transform_1(%arg0: i32, %arg1: i32) -> (i32, i32, i32) {
    %c0_i32 = arith.constant 0 : i32
    %c0_i32_0 = arith.constant 0 : i32
    %c0_i32_1 = arith.constant 0 : i32
    %c0_i32_2 = arith.constant 0 : i32
    return %c0_i32, %c0_i32_0, %c0_i32_1 : i32, i32, i32
  }
  func.func @transform_2(%arg0: i32, %arg1: i32) -> (i32, i32) {
    %c0_i32 = arith.constant 0 : i32
    %c0_i32_0 = arith.constant 0 : i32
    %c0_i32_1 = arith.constant 0 : i32
    return %c0_i32, %c0_i32_0 : i32, i32
  }
  func.func @transform_3(%arg0: i32, %arg1: i32) -> (i32, i32, i32) {
    %c0_i32 = arith.constant 0 : i32
    %c0_i32_0 = arith.constant 0 : i32
    return %arg0, %arg1, %c0_i32 : i32, i32, i32
  }
}

</mosaic_0001>

<bundles_post_ra>
// kernel: tcn_forward.5
= control target key start
LH: loop header
LB: loop body
LE: loop exit
PB: predicated region body
PF: predicated region fallthrough
CT: control target
= control target key end

     0   :  { %s534_s12 = smov 0   ;;  %s536_s13 = smov 0   ;;  %s629_s0 = inlined_call_operand.vmem [shape: f32[2,16,128], index: 0, kind: input, shape index: {}]   ;;  %s630_s1 = inlined_call_operand.vmem [shape: f32[1,128,128], index: 1, kind: input, shape index: {}]   ;;  %s631_s2 = inlined_call_operand.vmem [shape: f32[1,128], index: 2, kind: input, shape index: {}]   ;;  %s632_s3 = inlined_call_operand.vmem [shape: f32[2,16,128], index: 3, kind: output, shape index: {}]  }
   0x1   :  { %s538_s14 = smov 0  }
   0x2 LB: > { %s25_s15 = sadd.s32 1, %s508_s13  ;;  %p403_p0 = scmp.ge.s32.totalorder %s512_s14, 1  ;;  %s512_s14 = sphi %s538_s14, %s13_s14   ;;  %s508_s13 = sphi %s536_s13, %s634_s13   ;;  %s504_s12 = sphi %s534_s12, %s633_s12  }
   0x3   : > { %p27_p1 = scmp.ge.s32.totalorder %s25_s15, 2  ;;  %p158_p2 = scmp.lt.s32.totalorder %s512_s14, 3 }
   0x5   : > { %s636_s15 = smov (%p27_p1, %s25_s15), 0  ;;  %p159_p3 = pnand %p403_p0, %p158_p2 }
   0x6   : > { %p191_p4 = scmp.lt.s32.totalorder (!%p159_p3), %s504_s12, 1 }
   0x7   : > { %162 = sbr.rel (%p159_p3) target bundleno = 243 (0xf3), region = 32 }
   0xc   : > { %v227_v0 = vld [vmem:[%s630_s1 + $0x78] sm:$0xff]  ;;  %v226_v1 = vld [vmem:[%s630_s1 + $0x70] sm:$0xff]  ;;  %v225_v2 = vld [vmem:[%s630_s1 + $0x68] sm:$0xff]  ;;  %s638_s12 = smov (!%p191_p4, %s504_s12), 1 }
   0xd   : > { %431 = vmatprep.subr.mxu0 %v227_v0  ;;  %v224_v3 = vld [vmem:[%s630_s1 + $0x60] sm:$0xff]  ;;  %s411_s24 = sshll.u32 %s638_s12, 4  ;;  %v223_v4 = vld [vmem:[%s630_s1 + $0x58] sm:$0xff]  ;;  %v222_v6 = vld [vmem:[%s630_s1 + $0x50] sm:$0xff] }
   0xe   : > { %432 = vmatpush3.msra.mxu0 %v227_v0  ;;  %s572_s27 = scalar_lea.vmem %s629_s0, %s411_s24  ;;  %v221_v7 = vld [vmem:[%s630_s1 + $0x48] sm:$0xff]  ;;  %v220_v8 = vld [vmem:[%s630_s1 + $0x40] sm:$0xff]  ;;  %v219_v9 = vld [vmem:[%s630_s1 + $0x38] sm:$0xff]  ;;  %s208_s8 = scalar_lea.vmem %s632_s3, %s411_s24 }
   0xf   : > { %433 = vmatprep.subr.mxu0 %v226_v1  ;;  %v210_v5 = vld [vmem:[%s572_s27] sm:$0xff]  ;;  %v218_v10 = vld [vmem:[%s630_s1 + $0x30] sm:$0xff]  ;;  %v217_v11 = vld [vmem:[%s630_s1 + $0x28] sm:$0xff] }
  0x10   : > { %434 = vmatpush3.msra.mxu0 %v226_v1  ;;  %463 = vmatprep.mubr.f32.mxu0 %v210_v5  ;;  %v216_v12 = vld [vmem:[%s630_s1 + $0x20] sm:$0xff]  ;;  %v215_v13 = vld [vmem:[%s630_s1 + $0x18] sm:$0xff]  ;;  %v214_v14 = vld [vmem:[%s630_s1 + $0x10] sm:$0xff] }
  0x11   : > { %435 = vmatprep.subr.mxu0 %v225_v2  ;;  %v213_v15 = vld [vmem:[%s630_s1 + $0x8] sm:$0xff]  ;;  %v212_v16 = vld [vmem:[%s630_s1] sm:$0xff] }
  0x12   : > { %436 = vmatpush3.msra.mxu0 %v225_v2  ;;  %v211_v17 = vld [vmem:[%s572_s27 + $0x8] sm:$0xff]  ;;  %v408_v18 = vld [vmem:[%s631_s2] ss:$0 sm:$0xff] }
  0x13   : > { %437 = vmatprep.subr.mxu0 %v224_v3 }
  0x14   : > { %438 = vmatpush3.msra.mxu0 %v224_v3 }
  0x15   : > { %439 = vmatprep.subr.mxu0 %v223_v4 }
  0x16   : > { %440 = vmatpush3.msra.mxu0 %v223_v4 }
  0x17   : > { %441 = vmatprep.subr.mxu0 %v222_v6 }
  0x18   : > { %442 = vmatpush3.msra.mxu0 %v222_v6 }
  0x19   : > { %443 = vmatprep.subr.mxu0 %v221_v7 }
  0x1a   : > { %444 = vmatpush3.msra.mxu0 %v221_v7 }
  0x1b   : > { %445 = vmatprep.subr.mxu0 %v220_v8 }
  0x1c   : > { %446 = vmatpush3.msra.mxu0 %v220_v8 }
  0x1d   : > { %447 = vmatprep.subr.mxu0 %v219_v9 }
  0x1e   : > { %448 = vmatpush3.msra.mxu0 %v219_v9 }
  0x1f   : > { %449 = vmatprep.subr.mxu0 %v218_v10 }
  0x20   : > { %450 = vmatpush3.msra.mxu0 %v218_v10 }
  0x21   : > { %451 = vmatprep.subr.mxu0 %v217_v11 }
  0x22   : > { %452 = vmatpush3.msra.mxu0 %v217_v11 }
  0x23   : > { %453 = vmatprep.subr.mxu0 %v216_v12 }
  0x24   : > { %454 = vmatpush3.msra.mxu0 %v216_v12 }
  0x25   : > { %455 = vmatprep.subr.mxu0 %v215_v13 }
  0x26   : > { %456 = vmatpush3.msra.mxu0 %v215_v13 }
  0x27   : > { %457 = vmatprep.subr.mxu0 %v214_v14 }
  0x28   : > { %458 = vmatpush3.msra.mxu0 %v214_v14 }
  0x29   : > { %459 = vmatprep.subr.mxu0 %v213_v15 }
  0x2a   : > { %460 = vmatpush3.msra.mxu0 %v213_v15 }
  0x2b   : > { %461 = vmatprep.subr.mxu0 %v212_v16 }
  0x2c   : > { %462 = vmatpush3.msra.mxu0 %v212_v16 }
  0x2d   : > { %464 = vmatmul.mubr.f32.vlgmr.msra.gmra.mxu0 %v211_v17 }
  0xed   : > { %v465_v19 = vpop.f32.mrf.mxu0 }
  0xee   : > { %v307_v20 = vadd.f32 %v465_v19, %v408_v18 }
  0xef   : > { %v301_v21 = vpop.f32.mrf.mxu0 }
  0xf0   : > { %311 = vst [vmem:[%s208_s8 + $0x8] sm:$0xff] %v307_v20  ;;  %v302_v22 = vadd.f32 %v408_v18, %v301_v21 }
  0xf2   : > { %310 = vst [vmem:[%s208_s8] sm:$0xff] %v302_v22 }
  0xf3 PF: > { %s13_s14 = sadd.s32 1, %s512_s14   ;;  %s633_s12 = smov %s508_s13 }
  0xf4   : > { %p10_p5 = scmp.ge.s32.totalorder %s13_s14, 4   ;;  %s634_s13 = smov %s636_s15 }
  0xf6   :  { %12 = sbr.rel (!%p10_p5) target bundleno = 2 (0x2), region = 62 }

// kernel: tcn_forward.3
= control target key start
LH: loop header
LB: loop body
LE: loop exit
PB: predicated region body
PF: predicated region fallthrough
CT: control target
= control target key end

     0   :  { %s1666_s24 = smov 0   ;;  %s1668_s25 = smov 0   ;;  %s2098_s0 = inlined_call_operand.vmem [shape: f32[2,16,128], index: 0, kind: input, shape index: {}]   ;;  %s2099_s1 = inlined_call_operand.vmem [shape: f32[3,128,128], index: 1, kind: input, shape index: {}]   ;;  %s2100_s2 = inlined_call_operand.vmem [shape: f32[1,128], index: 2, kind: input, shape index: {}]   ;;  %s2101_s3 = inlined_call_operand.vmem [shape: f32[3,128,128], index: 3, kind: input, shape index: {}]   ;;  %s2102_s4 = inlined_call_operand.vmem [shape: f32[1,128], index: 4, kind: input, shape index: {}]   ;;  %s2103_s5 = inlined_call_operand.vmem [shape: f32[1,128,128], index: 5, kind: input, shape index: {}]   ;;  %s2104_s6 = inlined_call_operand.vmem [shape: f32[1,128], index: 6, kind: input, shape index: {}]   ;;  %s2105_s7 = inlined_call_operand.vmem [shape: f32[2,16,128], index: 7, kind: output, shape index: {}]  }
   0x1   :  { %s1670_s26 = smov 0  }
   0x2 LB: > { %s29_s27 = sadd.s32 1, %s1619_s25  ;;  %p1129_p0 = scmp.ge.s32.totalorder %s1623_s26, 1  ;;  %s1623_s26 = sphi %s1670_s26, %s17_s26   ;;  %s1619_s25 = sphi %s1668_s25, %s2107_s25   ;;  %s1615_s24 = sphi %s1666_s24, %s2106_s24  }
   0x3   : > { %p31_p1 = scmp.ge.s32.totalorder %s29_s27, 2  ;;  %p258_p2 = scmp.lt.s32.totalorder %s1623_s26, 3 }
   0x5   : > { %s2109_s27 = smov (%p31_p1, %s29_s27), 0  ;;  %p259_p3 = pnand %p1129_p0, %p258_p2 }
   0x6   : > { %p299_p4 = scmp.lt.s32.totalorder (!%p259_p3), %s1615_s24, 1  ;;  %s322_s11 = smul.u32 (!%p259_p3), 24, %s1615_s24 }
   0x7   : > { %262 = sbr.rel (%p259_p3) target bundleno = 525 (0x20d), region = 48 }
   0x8   : > { %s1718_s28 = scalar_lea.vmem (!%p259_p3), [#allocation2], %s322_s11  ;;  %s1877_s21 = scalar_lea.vmem (!%p259_p3), [#allocation3], %s322_s11 }
   0xc   : > { %v1149_v0 = vld [vmem:[%s2099_s1 + $0xf8] sm:$0xff]  ;;  %v1148_v2 = vld [vmem:[%s2099_s1 + $0xf0] sm:$0xff]  ;;  %v1147_v4 = vld [vmem:[%s2099_s1 + $0xe8] sm:$0xff]  ;;  %s1707_s18 = scalar_select %p299_p4, %s1615_s24, 1  ;;  %v1625_v8 = vmov 0.0  }
   0xd   : > { %v350_v1 = vld [vmem:[%s2099_s1 + $0x78] sm:$0xff]  ;;  %1331 = vmatprep.subr.mxu0 %v1149_v0  ;;  %v349_v3 = vld [vmem:[%s2099_s1 + $0x70] sm:$0xff]  ;;  %v348_v5 = vld [vmem:[%s2099_s1 + $0x68] sm:$0xff]  ;;  %324 = vst [vmem:[%s1718_s28] sm:$0xff] %v1625_v8 }
   0xe   : > { %1366 = vmatprep.subr.mxu1 %v350_v1  ;;  %1332 = vmatpush3.msra.mxu0 %v1149_v0  ;;  %v1146_v6 = vld [vmem:[%s2099_s1 + $0xe0] sm:$0xff]  ;;  %s1203_s23 = sshll.u32 %s1707_s18, 4  ;;  %v1145_v9 = vld [vmem:[%s2099_s1 + $0xd8] sm:$0xff]  ;;  %v1144_v11 = vld [vmem:[%s2099_s1 + $0xd0] sm:$0xff]  ;;  %326 = vst [vmem:[%s1877_s21] sm:$0xff] %v1625_v8 }
   0xf   : > { %1367 = vmatpush3.msra.mxu1 %v350_v1  ;;  %1333 = vmatprep.subr.mxu0 %v1148_v2  ;;  %v347_v7 = vld [vmem:[%s2099_s1 + $0x60] sm:$0xff]  ;;  %v346_v10 = vld [vmem:[%s2099_s1 + $0x58] sm:$0xff]  ;;  %s306_s13 = scalar_lea.vmem %s2098_s0, %s1203_s23  ;;  %v345_v12 = vld [vmem:[%s2099_s1 + $0x50] sm:$0xff]  ;;  %s316_s11 = scalar_lea.vmem %s2105_s7, %s1203_s23 }
  0x10   : > { %1368 = vmatprep.subr.mxu1 %v349_v3  ;;  %1334 = vmatpush3.msra.mxu0 %v1148_v2  ;;  %v1143_v13 = vld [vmem:[%s2099_s1 + $0xc8] sm:$0xff]  ;;  %v1745_v15 = vld [vmem:[%s306_s13] sm:$0xff]  ;;  %v1141_v19 = vld [vmem:[%s2099_s1 + $0xb8] sm:$0xff] }
  0x11   : > { %1369 = vmatpush3.msra.mxu1 %v349_v3  ;;  %1335 = vmatprep.subr.mxu0 %v1147_v4  ;;  %v344_v14 = vld [vmem:[%s2099_s1 + $0x48] sm:$0xff]  ;;  %331 = vst [vmem:[%s1718_s28 + $0x8] sm:$0xff] %v1745_v15  ;;  %v1142_v17 = vld [vmem:[%s2099_s1 + $0xc0] sm:$0xff]  ;;  %v342_v20 = vld [vmem:[%s2099_s1 + $0x38] sm:$0xff] }
  0x12   : > { %1370 = vmatprep.subr.mxu1 %v348_v5  ;;  %1336 = vmatpush3.msra.mxu0 %v1147_v4  ;;  %v1747_v16 = vld [vmem:[%s306_s13 + $0x8] sm:$0xff]  ;;  %v343_v18 = vld [vmem:[%s2099_s1 + $0x40] sm:$0xff]  ;;  %v1140_v21 = vld [vmem:[%s2099_s1 + $0xb0] sm:$0xff] }
  0x13   : > { %1371 = vmatpush3.msra.mxu1 %v348_v5  ;;  %1337 = vmatprep.subr.mxu0 %v1146_v6  ;;  %332 = vst [vmem:[%s1718_s28 + $0x10] sm:$0xff] %v1747_v16  ;;  %v341_v22 = vld [vmem:[%s2099_s1 + $0x30] sm:$0xff]  ;;  %v1139_v23 = vld [vmem:[%s2099_s1 + $0xa8] sm:$0xff]  ;;  %v1138_v27 = vld [vmem:[%s2099_s1 + $0xa0] sm:$0xff] }
  0x14   : > { %1372 = vmatprep.subr.mxu1 %v347_v7  ;;  %1338 = vmatpush3.msra.mxu0 %v1146_v6  ;;  %v340_v24 = vld [vmem:[%s2099_s1 + $0x28] sm:$0xff]  ;;  %v339_v28 = vld [vmem:[%s2099_s1 + $0x20] sm:$0xff]  ;;  %v1137_v29 = vld [vmem:[%s2099_s1 + $0x98] sm:$0xff] }
  0x15   : > { %1373 = vmatpush3.msra.mxu1 %v347_v7  ;;  %1339 = vmatprep.subr.mxu0 %v1145_v9  ;;  %v338_v30 = vld [vmem:[%s2099_s1 + $0x18] sm:$0xff]  ;;  %v1136_v31 = vld [vmem:[%s2099_s1 + $0x90] sm:$0xff]  ;;  %v1135_v33 = vld [vmem:[%s2099_s1 + $0x88] sm:$0xff] }
  0x16   : > { %1374 = vmatprep.subr.mxu1 %v346_v10  ;;  %1340 = vmatpush3.msra.mxu0 %v1145_v9  ;;  %v337_v32 = vld [vmem:[%s2099_s1 + $0x10] sm:$0xff]  ;;  %v336_v34 = vld [vmem:[%s2099_s1 + $0x8] sm:$0xff]  ;;  %v1134_v35 = vld [vmem:[%s2099_s1 + $0x80] sm:$0xff] }
  0x17   : > { %1375 = vmatpush3.msra.mxu1 %v346_v10  ;;  %1341 = vmatprep.subr.mxu0 %v1144_v11  ;;  %v335_v36 = vld [vmem:[%s2099_s1] sm:$0xff]  ;;  %v1165_v39 = vld [vmem:[%s2099_s1 + $0x178] sm:$0xff]  ;;  %v1164_v40 = vld [vmem:[%s2099_s1 + $0x170] sm:$0xff] }
  0x18   : > { %1376 = vmatprep.subr.mxu1 %v345_v12  ;;  %1342 = vmatpush3.msra.mxu0 %v1144_v11  ;;  %v351_v25 = vld [vmem:[%s1718_s28 + $0x7] sm:$0xff]  ;;  %v1161_v43 = vld [vmem:[%s2099_s1 + $0x158] sm:$0xff]  ;;  %v1160_v44 = vld [vmem:[%s2099_s1 + $0x150] sm:$0xff] }
  0x19   : > { %1377 = vmatpush3.msra.mxu1 %v345_v12  ;;  %1343 = vmatprep.subr.mxu0 %v1143_v13  ;;  %v333_v26 = vld [vmem:[%s1718_s28 + $0x6] sm:$0xff]  ;;  %v1157_v47 = vld [vmem:[%s2099_s1 + $0x138] sm:$0xff]  ;;  %v1156_v48 = vld [vmem:[%s2099_s1 + $0x130] sm:$0xff] }
  0x1a   : > { %1378 = vmatprep.subr.mxu1 %v344_v14  ;;  %1344 = vmatpush3.msra.mxu0 %v1143_v13  ;;  %1027 = vst [vmem:[%s1718_s28] sm:$0xff] %v1747_v16  ;;  %v352_v37 = vld [vmem:[%s1718_s28 + $0xf] sm:$0xff]  ;;  %v1162_v42 = vld [vmem:[%s2099_s1 + $0x160] sm:$0xff]  ;;  %v1153_v51 = vld [vmem:[%s2099_s1 + $0x118] sm:$0xff] }
  0x1b   : > { %1379 = vmatpush3.msra.mxu1 %v344_v14  ;;  %1345 = vmatprep.subr.mxu0 %v1142_v17  ;;  %v334_v38 = vld [vmem:[%s1718_s28 + $0xe] sm:$0xff]  ;;  %v1158_v46 = vld [vmem:[%s2099_s1 + $0x140] sm:$0xff]  ;;  %v1182_v55 = vld [vmem:[%s2101_s3 + $0xf8] sm:$0xff] }
  0x1c   : > { %1380 = vmatprep.subr.mxu1 %v343_v18  ;;  %1346 = vmatpush3.msra.mxu0 %v1142_v17  ;;  %v1163_v41 = vld [vmem:[%s2099_s1 + $0x168] sm:$0xff]  ;;  %v1154_v50 = vld [vmem:[%s2099_s1 + $0x120] sm:$0xff]  ;;  %v1152_v52 = vld [vmem:[%s2099_s1 + $0x110] sm:$0xff] }
  0x1d   : > { %1381 = vmatpush3.msra.mxu1 %v343_v18  ;;  %1347 = vmatprep.subr.mxu0 %v1141_v19  ;;  %v1159_v45 = vld [vmem:[%s2099_s1 + $0x148] sm:$0xff]  ;;  %v1150_v54 = vld [vmem:[%s2099_s1 + $0x100] sm:$0xff]  ;;  %v647_v56 = vld [vmem:[%s2101_s3 + $0x78] sm:$0xff] }
  0x1e   : > { %1382 = vmatprep.subr.mxu1 %v342_v20  ;;  %1348 = vmatpush3.msra.mxu0 %v1141_v19  ;;  %v1155_v49 = vld [vmem:[%s2099_s1 + $0x128] sm:$0xff]  ;;  %v1181_v57 = vld [vmem:[%s2101_s3 + $0xf0] sm:$0xff]  ;;  %v1179_v61 = vld [vmem:[%s2101_s3 + $0xe0] sm:$0xff] }
  0x1f   : > { %1383 = vmatpush3.msra.mxu1 %v342_v20  ;;  %1349 = vmatprep.subr.mxu0 %v1140_v21  ;;  %v1151_v53 = vld [vmem:[%s2099_s1 + $0x108] sm:$0xff]  ;;  %v646_v58 = vld [vmem:[%s2101_s3 + $0x70] sm:$0xff]  ;;  %v644_v62 = vld [vmem:[%s2101_s3 + $0x60] sm:$0xff] }
  0x20   : > { %1384 = vmatprep.subr.mxu1 %v341_v22  ;;  %1350 = vmatpush3.msra.mxu0 %v1140_v21  ;;  %v1180_v59 = vld [vmem:[%s2101_s3 + $0xe8] sm:$0xff]  ;;  %v1178_v63 = vld [vmem:[%s2101_s3 + $0xd8] sm:$0xff]  ;;  %v1177_v1 = vld [vmem:[%s2101_s3 + $0xd0] sm:$0xff] }
  0x21   : > { %1385 = vmatpush3.msra.mxu1 %v341_v22  ;;  %1351 = vmatprep.subr.mxu0 %v1139_v23  ;;  %v645_v60 = vld [vmem:[%s2101_s3 + $0x68] sm:$0xff]  ;;  %v643_v0 = vld [vmem:[%s2101_s3 + $0x58] sm:$0xff]  ;;  %v642_v2 = vld [vmem:[%s2101_s3 + $0x50] sm:$0xff] }
  0x22   : > { %1386 = vmatprep.subr.mxu1 %v340_v24  ;;  %1352 = vmatpush3.msra.mxu0 %v1139_v23  ;;  %v1176_v3 = vld [vmem:[%s2101_s3 + $0xc8] sm:$0xff]  ;;  %v1175_v5 = vld [vmem:[%s2101_s3 + $0xc0] sm:$0xff]  ;;  %v1174_v7 = vld [vmem:[%s2101_s3 + $0xb8] sm:$0xff] }
  0x23   : > { %1387 = vmatpush3.msra.mxu1 %v340_v24  ;;  %1353 = vmatprep.subr.mxu0 %v1138_v27  ;;  %v641_v4 = vld [vmem:[%s2101_s3 + $0x48] sm:$0xff]  ;;  %v640_v6 = vld [vmem:[%s2101_s3 + $0x40] sm:$0xff]  ;;  %v639_v8 = vld [vmem:[%s2101_s3 + $0x38] sm:$0xff] }
  0x24   : > { %1388 = vmatprep.subr.mxu1 %v339_v28  ;;  %1354 = vmatpush3.msra.mxu0 %v1138_v27  ;;  %v1173_v9 = vld [vmem:[%s2101_s3 + $0xb0] sm:$0xff]  ;;  %v1172_v11 = vld [vmem:[%s2101_s3 + $0xa8] sm:$0xff]  ;;  %v1171_v13 = vld [vmem:[%s2101_s3 + $0xa0] sm:$0xff] }
  0x25   : > { %1389 = vmatpush3.msra.mxu1 %v339_v28  ;;  %1355 = vmatprep.subr.mxu0 %v1137_v29  ;;  %v638_v10 = vld [vmem:[%s2101_s3 + $0x30] sm:$0xff]  ;;  %v637_v12 = vld [vmem:[%s2101_s3 + $0x28] sm:$0xff]  ;;  %v636_v14 = vld [vmem:[%s2101_s3 + $0x20] sm:$0xff] }
  0x26   : > { %1390 = vmatprep.subr.mxu1 %v338_v30  ;;  %1356 = vmatpush3.msra.mxu0 %v1137_v29  ;;  %v1170_v17 = vld [vmem:[%s2101_s3 + $0x98] sm:$0xff]  ;;  %v1169_v19 = vld [vmem:[%s2101_s3 + $0x90] sm:$0xff]  ;;  %v1168_v21 = vld [vmem:[%s2101_s3 + $0x88] sm:$0xff] }
  0x27   : > { %1391 = vmatpush3.msra.mxu1 %v338_v30  ;;  %1357 = vmatprep.subr.mxu0 %v1136_v31  ;;  %v635_v18 = vld [vmem:[%s2101_s3 + $0x18] sm:$0xff]  ;;  %v634_v20 = vld [vmem:[%s2101_s3 + $0x10] sm:$0xff]  ;;  %v633_v22 = vld [vmem:[%s2101_s3 + $0x8] sm:$0xff] }
  0x28   : > { %1392 = vmatprep.subr.mxu1 %v337_v32  ;;  %1358 = vmatpush3.msra.mxu0 %v1136_v31  ;;  %v1167_v23 = vld [vmem:[%s2101_s3 + $0x80] sm:$0xff] }
  0x29   : > { %1393 = vmatpush3.msra.mxu1 %v337_v32  ;;  %1359 = vmatprep.subr.mxu0 %v1135_v33  ;;  %v632_v24 = vld [vmem:[%s2101_s3] sm:$0xff] }
  0x2a   : > { %1394 = vmatprep.subr.mxu1 %v336_v34  ;;  %1360 = vmatpush3.msra.mxu0 %v1135_v33  ;;  %v1166_v33 = vld [vmem:[%s2100_s2] ss:$0 sm:$0xff] }
  0x2b   : > { %1395 = vmatpush3.msra.mxu1 %v336_v34  ;;  %1361 = vmatprep.subr.mxu0 %v1134_v35 }
  0x2c   : > { %1396 = vmatprep.subr.mxu1 %v335_v36  ;;  %1362 = vmatpush3.msra.mxu0 %v1134_v35 }
  0x2d   : > { %1363 = vmatprep.mubr.f32.mxu0 %v351_v25  ;;  %1397 = vmatpush3.msra.mxu1 %v335_v36  ;;  %v1198_v25 = vld [vmem:[%s2101_s3 + $0x178] sm:$0xff] }
  0x2e   : > { %1398 = vmatprep.mubr.f32.mxu1 %v333_v26  ;;  %1364 = vmatmul.mubr.f32.vlgmr.msra.gmra.mxu0 %v352_v37  ;;  %v939_v26 = vld [vmem:[%s2103_s5 + $0x78] sm:$0xff] }
  0x2f   : > { %1399 = vmatmul.mubr.f32.vlgmr.msra.gmra.mxu1 %v334_v38  ;;  %1401 = vmatprep.subr.mxu0 %v1165_v39 }
  0x30   : > { %1433 = vmatprep.mubr.f32.mxu0 %v1745_v15  ;;  %1402 = vmatpush3.msra.mxu0 %v1165_v39 }
  0x31   : > { %1403 = vmatprep.subr.mxu0 %v1164_v40  ;;  %1436 = vmatprep.subr.mxu1 %v1182_v55 }
  0x32   : > { %1404 = vmatpush3.msra.mxu0 %v1164_v40  ;;  %1437 = vmatpush3.msra.mxu1 %v1182_v55  ;;  %v934_v55 = vld [vmem:[%s2103_s5 + $0x50] sm:$0xff] }
  0x33   : > { %1405 = vmatprep.subr.mxu0 %v1163_v41  ;;  %1438 = vmatprep.subr.mxu1 %v1181_v57 }
  0x34   : > { %1406 = vmatpush3.msra.mxu0 %v1163_v41  ;;  %1439 = vmatpush3.msra.mxu1 %v1181_v57  ;;  %v933_v57 = vld [vmem:[%s2103_s5 + $0x48] sm:$0xff] }
  0x35   : > { %1407 = vmatprep.subr.mxu0 %v1162_v42  ;;  %1440 = vmatprep.subr.mxu1 %v1180_v59 }
  0x36   : > { %1408 = vmatpush3.msra.mxu0 %v1162_v42  ;;  %1441 = vmatpush3.msra.mxu1 %v1180_v59  ;;  %v932_v59 = vld [vmem:[%s2103_s5 + $0x40] sm:$0xff] }
  0x37   : > { %1409 = vmatprep.subr.mxu0 %v1161_v43  ;;  %1442 = vmatprep.subr.mxu1 %v1179_v61 }
  0x38   : > { %1410 = vmatpush3.msra.mxu0 %v1161_v43  ;;  %1443 = vmatpush3.msra.mxu1 %v1179_v61  ;;  %v931_v61 = vld [vmem:[%s2103_s5 + $0x38] sm:$0xff] }
  0x39   : > { %1411 = vmatprep.subr.mxu0 %v1160_v44  ;;  %1444 = vmatprep.subr.mxu1 %v1178_v63 }
  0x3a   : > { %1412 = vmatpush3.msra.mxu0 %v1160_v44  ;;  %1445 = vmatpush3.msra.mxu1 %v1178_v63  ;;  %v930_v63 = vld [vmem:[%s2103_s5 + $0x30] sm:$0xff] }
  0x3b   : > { %1413 = vmatprep.subr.mxu0 %v1159_v45  ;;  %1446 = vmatprep.subr.mxu1 %v1177_v1 }
  0x3c   : > { %1414 = vmatpush3.msra.mxu0 %v1159_v45  ;;  %1447 = vmatpush3.msra.mxu1 %v1177_v1  ;;  %v929_v1 = vld [vmem:[%s2103_s5 + $0x28] sm:$0xff] }
  0x3d   : > { %1415 = vmatprep.subr.mxu0 %v1158_v46  ;;  %1448 = vmatprep.subr.mxu1 %v1176_v3 }
  0x3e   : > { %1416 = vmatpush3.msra.mxu0 %v1158_v46  ;;  %1449 = vmatpush3.msra.mxu1 %v1176_v3  ;;  %v1197_v46 = vld [vmem:[%s2101_s3 + $0x170] sm:$0xff]  ;;  %v928_v3 = vld [vmem:[%s2103_s5 + $0x20] sm:$0xff] }
  0x3f   : > { %1417 = vmatprep.subr.mxu0 %v1157_v47  ;;  %1450 = vmatprep.subr.mxu1 %v1175_v5 }
  0x40   : > { %1418 = vmatpush3.msra.mxu0 %v1157_v47  ;;  %1451 = vmatpush3.msra.mxu1 %v1175_v5  ;;  %v938_v47 = vld [vmem:[%s2103_s5 + $0x70] sm:$0xff]  ;;  %v927_v5 = vld [vmem:[%s2103_s5 + $0x18] sm:$0xff] }
  0x41   : > { %1419 = vmatprep.subr.mxu0 %v1156_v48  ;;  %1452 = vmatprep.subr.mxu1 %v1174_v7 }
  0x42   : > { %1420 = vmatpush3.msra.mxu0 %v1156_v48  ;;  %1453 = vmatpush3.msra.mxu1 %v1174_v7  ;;  %v1196_v48 = vld [vmem:[%s2101_s3 + $0x168] sm:$0xff]  ;;  %v926_v7 = vld [vmem:[%s2103_s5 + $0x10] sm:$0xff] }
  0x43   : > { %1421 = vmatprep.subr.mxu0 %v1155_v49  ;;  %1454 = vmatprep.subr.mxu1 %v1173_v9 }
  0x44   : > { %1422 = vmatpush3.msra.mxu0 %v1155_v49  ;;  %1455 = vmatpush3.msra.mxu1 %v1173_v9  ;;  %v937_v49 = vld [vmem:[%s2103_s5 + $0x68] sm:$0xff] }
  0x45   : > { %1423 = vmatprep.subr.mxu0 %v1154_v50  ;;  %1456 = vmatprep.subr.mxu1 %v1172_v11  ;;  %v925_v9 = vld [vmem:[%s2103_s5 + $0x8] sm:$0xff] }
  0x46   : > { %1424 = vmatpush3.msra.mxu0 %v1154_v50  ;;  %1457 = vmatpush3.msra.mxu1 %v1172_v11  ;;  %v1195_v50 = vld [vmem:[%s2101_s3 + $0x160] sm:$0xff] }
  0x47   : > { %1425 = vmatprep.subr.mxu0 %v1153_v51  ;;  %1458 = vmatprep.subr.mxu1 %v1171_v13  ;;  %v924_v11 = vld [vmem:[%s2103_s5] sm:$0xff] }
  0x48   : > { %1426 = vmatpush3.msra.mxu0 %v1153_v51  ;;  %1459 = vmatpush3.msra.mxu1 %v1171_v13  ;;  %v936_v51 = vld [vmem:[%s2103_s5 + $0x60] sm:$0xff] }
  0x49   : > { %1427 = vmatprep.subr.mxu0 %v1152_v52  ;;  %1460 = vmatprep.subr.mxu1 %v1170_v17 }
  0x4a   : > { %1428 = vmatpush3.msra.mxu0 %v1152_v52  ;;  %1461 = vmatpush3.msra.mxu1 %v1170_v17  ;;  %v1194_v52 = vld [vmem:[%s2101_s3 + $0x158] sm:$0xff] }
  0x4b   : > { %1429 = vmatprep.subr.mxu0 %v1151_v53  ;;  %1462 = vmatprep.subr.mxu1 %v1169_v19 }
  0x4c   : > { %1430 = vmatpush3.msra.mxu0 %v1151_v53  ;;  %1463 = vmatpush3.msra.mxu1 %v1169_v19  ;;  %v935_v53 = vld [vmem:[%s2103_s5 + $0x58] sm:$0xff] }
  0x4d   : > { %1431 = vmatprep.subr.mxu0 %v1150_v54  ;;  %1464 = vmatprep.subr.mxu1 %v1168_v21 }
  0x4e   : > { %1432 = vmatpush3.msra.mxu0 %v1150_v54  ;;  %1465 = vmatpush3.msra.mxu1 %v1168_v21  ;;  %v1193_v54 = vld [vmem:[%s2101_s3 + $0x150] sm:$0xff]  ;;  %v1200_v21 = vld [vmem:[%s2104_s6] ss:$0 sm:$0xff] }
  0x4f   : > { %1434 = vmatmul.mubr.f32.vlgmr.msra.gmra.mxu0 %v1747_v16  ;;  %1471 = vmatprep.subr.mxu0 %v647_v56 }
  0x50   : > { %1472 = vmatpush3.msra.mxu0 %v647_v56  ;;  %1466 = vmatprep.subr.mxu1 %v1167_v23  ;;  %v1192_v56 = vld [vmem:[%s2101_s3 + $0x148] sm:$0xff] }
  0x51   : > { %1473 = vmatprep.subr.mxu0 %v646_v58  ;;  %1467 = vmatpush3.msra.mxu1 %v1167_v23 }
  0x52   : > { %1474 = vmatpush3.msra.mxu0 %v646_v58  ;;  %1506 = vmatprep.subr.mxu1 %v1198_v25  ;;  %v1191_v58 = vld [vmem:[%s2101_s3 + $0x140] sm:$0xff] }
  0x53   : > { %1475 = vmatprep.subr.mxu0 %v645_v60 }
  0x54   : > { %1476 = vmatpush3.msra.mxu0 %v645_v60  ;;  %v1190_v60 = vld [vmem:[%s2101_s3 + $0x138] sm:$0xff] }
  0x55   : > { %1477 = vmatprep.subr.mxu0 %v644_v62 }
  0x56   : > { %1478 = vmatpush3.msra.mxu0 %v644_v62  ;;  %v1189_v62 = vld [vmem:[%s2101_s3 + $0x130] sm:$0xff] }
  0x57   : > { %1479 = vmatprep.subr.mxu0 %v643_v0 }
  0x58   : > { %1480 = vmatpush3.msra.mxu0 %v643_v0  ;;  %v1188_v0 = vld [vmem:[%s2101_s3 + $0x128] sm:$0xff] }
  0x59   : > { %1481 = vmatprep.subr.mxu0 %v642_v2 }
  0x5a   : > { %1482 = vmatpush3.msra.mxu0 %v642_v2  ;;  %v1187_v2 = vld [vmem:[%s2101_s3 + $0x120] sm:$0xff] }
  0x5b   : > { %1483 = vmatprep.subr.mxu0 %v641_v4 }
  0x5c   : > { %1484 = vmatpush3.msra.mxu0 %v641_v4  ;;  %v1186_v4 = vld [vmem:[%s2101_s3 + $0x118] sm:$0xff] }
  0x5d   : > { %1485 = vmatprep.subr.mxu0 %v640_v6 }
  0x5e   : > { %1486 = vmatpush3.msra.mxu0 %v640_v6  ;;  %v1185_v6 = vld [vmem:[%s2101_s3 + $0x110] sm:$0xff] }
  0x5f   : > { %1487 = vmatprep.subr.mxu0 %v639_v8 }
  0x60   : > { %1488 = vmatpush3.msra.mxu0 %v639_v8  ;;  %v1184_v8 = vld [vmem:[%s2101_s3 + $0x108] sm:$0xff] }
  0x61   : > { %1489 = vmatprep.subr.mxu0 %v638_v10 }
  0x62   : > { %1490 = vmatpush3.msra.mxu0 %v638_v10  ;;  %v1183_v10 = vld [vmem:[%s2101_s3 + $0x100] sm:$0xff] }
  0x63   : > { %1491 = vmatprep.subr.mxu0 %v637_v12 }
  0x64   : > { %1492 = vmatpush3.msra.mxu0 %v637_v12 }
  0x65   : > { %1493 = vmatprep.subr.mxu0 %v636_v14 }
  0x66   : > { %1494 = vmatpush3.msra.mxu0 %v636_v14 }
  0x67   : > { %1495 = vmatprep.subr.mxu0 %v635_v18 }
  0x68   : > { %1496 = vmatpush3.msra.mxu0 %v635_v18 }
  0x69   : > { %1497 = vmatprep.subr.mxu0 %v634_v20 }
  0x6a   : > { %1498 = vmatpush3.msra.mxu0 %v634_v20  ;;  %v1199_v20 = vld [vmem:[%s2102_s4] ss:$0 sm:$0xff] }
  0x6b   : > { %1499 = vmatprep.subr.mxu0 %v633_v22 }
  0x6c   : > { %1500 = vmatpush3.msra.mxu0 %v633_v22 }
  0x6d   : > { %1501 = vmatprep.subr.mxu0 %v632_v24 }
  0x6e   : > { %1502 = vmatpush3.msra.mxu0 %v632_v24 }
  0x6f   : > { %1541 = vmatprep.subr.mxu0 %v939_v26 }
  0xee   : > { %v1365_v27 = vpop.f32.mrf.mxu0 }
  0xef   : > { %v1400_v28 = vpop.f32.mrf.mxu1 }
  0xf0   : > { %v436_v29 = vpop.f32.mrf.mxu0  ;;  %v517_v31 = vadd.f32 %v1400_v28, %v1365_v27 }
  0xf1   : > { %v511_v30 = vpop.f32.mrf.mxu1 }
  0xf2   : > { %v512_v34 = vadd.f32 %v511_v30, %v436_v29 }
 0x10f   : > { %v1435_v32 = vpop.f32.mrf.mxu0 }
 0x110   : > { %v615_v35 = vadd.f32 %v1435_v32, %v517_v31 }
 0x111   : > { %v605_v36 = vpop.f32.mrf.mxu0 }
 0x112   : > { %v624_v37 = vadd.f32 %v1166_v33, %v615_v35  ;;  %v614_v38 = vadd.f32 %v605_v36, %v512_v34 }
 0x114   : > { %v1974_v39 = vmax.f32 %v624_v37, 0.0  ;;  %v623_v40 = vadd.f32 %v1166_v33, %v614_v38 }
 0x116   : > { %629 = vst [vmem:[%s1877_s21 + $0x10] sm:$0xff] %v1974_v39  ;;  %v625_v41 = vmax.f32 %v623_v40, 0.0 }
 0x118   : > { %628 = vst [vmem:[%s1877_s21 + $0x8] sm:$0xff] %v625_v41 }
 0x11f   : > { %v648_v42 = vld [vmem:[%s1877_s21 + $0x7] sm:$0xff]  ;;  %v649_v44 = vld [vmem:[%s1877_s21 + $0xf] sm:$0xff] }
 0x120   : > { %v630_v43 = vld [vmem:[%s1877_s21 + $0x6] sm:$0xff]  ;;  %1468 = vmatprep.mubr.f32.mxu1 %v648_v42  ;;  %v631_v45 = vld [vmem:[%s1877_s21 + $0xe] sm:$0xff] }
 0x121   : > { %1503 = vmatprep.mubr.f32.mxu0 %v630_v43  ;;  %1029 = vst [vmem:[%s1877_s21] sm:$0xff] %v1974_v39  ;;  %1469 = vmatmul.mubr.f32.vlgmr.msra.gmra.mxu1 %v649_v44 }
 0x122   : > { %1504 = vmatmul.mubr.f32.vlgmr.msra.gmra.mxu0 %v631_v45  ;;  %1507 = vmatpush3.msra.mxu1 %v1198_v25 }
 0x123   : > { %1538 = vmatprep.mubr.f32.mxu1 %v625_v41  ;;  %1508 = vmatprep.subr.mxu1 %v1197_v46 }
 0x124   : > { %1542 = vmatpush3.msra.mxu0 %v939_v26  ;;  %1509 = vmatpush3.msra.mxu1 %v1197_v46 }
 0x125   : > { %1543 = vmatprep.subr.mxu0 %v938_v47  ;;  %1510 = vmatprep.subr.mxu1 %v1196_v48 }
 0x126   : > { %1544 = vmatpush3.msra.mxu0 %v938_v47  ;;  %1511 = vmatpush3.msra.mxu1 %v1196_v48 }
 0x127   : > { %1545 = vmatprep.subr.mxu0 %v937_v49  ;;  %1512 = vmatprep.subr.mxu1 %v1195_v50 }
 0x128   : > { %1546 = vmatpush3.msra.mxu0 %v937_v49  ;;  %1513 = vmatpush3.msra.mxu1 %v1195_v50 }
 0x129   : > { %1547 = vmatprep.subr.mxu0 %v936_v51  ;;  %1514 = vmatprep.subr.mxu1 %v1194_v52 }
 0x12a   : > { %1548 = vmatpush3.msra.mxu0 %v936_v51  ;;  %1515 = vmatpush3.msra.mxu1 %v1194_v52 }
 0x12b   : > { %1549 = vmatprep.subr.mxu0 %v935_v53  ;;  %1516 = vmatprep.subr.mxu1 %v1193_v54 }
 0x12c   : > { %1550 = vmatpush3.msra.mxu0 %v935_v53  ;;  %1517 = vmatpush3.msra.mxu1 %v1193_v54 }
 0x12d   : > { %1551 = vmatprep.subr.mxu0 %v934_v55  ;;  %1518 = vmatprep.subr.mxu1 %v1192_v56 }
 0x12e   : > { %1552 = vmatpush3.msra.mxu0 %v934_v55  ;;  %1519 = vmatpush3.msra.mxu1 %v1192_v56 }
 0x12f   : > { %1553 = vmatprep.subr.mxu0 %v933_v57  ;;  %1520 = vmatprep.subr.mxu1 %v1191_v58 }
 0x130   : > { %1554 = vmatpush3.msra.mxu0 %v933_v57  ;;  %1521 = vmatpush3.msra.mxu1 %v1191_v58 }
 0x131   : > { %1555 = vmatprep.subr.mxu0 %v932_v59  ;;  %1522 = vmatprep.subr.mxu1 %v1190_v60 }
 0x132   : > { %1556 = vmatpush3.msra.mxu0 %v932_v59  ;;  %1523 = vmatpush3.msra.mxu1 %v1190_v60 }
 0x133   : > { %1557 = vmatprep.subr.mxu0 %v931_v61  ;;  %1524 = vmatprep.subr.mxu1 %v1189_v62 }
 0x134   : > { %1558 = vmatpush3.msra.mxu0 %v931_v61  ;;  %1525 = vmatpush3.msra.mxu1 %v1189_v62 }
 0x135   : > { %1559 = vmatprep.subr.mxu0 %v930_v63  ;;  %1526 = vmatprep.subr.mxu1 %v1188_v0 }
 0x136   : > { %1560 = vmatpush3.msra.mxu0 %v930_v63  ;;  %1527 = vmatpush3.msra.mxu1 %v1188_v0 }
 0x137   : > { %1561 = vmatprep.subr.mxu0 %v929_v1  ;;  %1528 = vmatprep.subr.mxu1 %v1187_v2 }
 0x138   : > { %1562 = vmatpush3.msra.mxu0 %v929_v1  ;;  %1529 = vmatpush3.msra.mxu1 %v1187_v2 }
 0x139   : > { %1563 = vmatprep.subr.mxu0 %v928_v3  ;;  %1530 = vmatprep.subr.mxu1 %v1186_v4 }
 0x13a   : > { %1564 = vmatpush3.msra.mxu0 %v928_v3  ;;  %1531 = vmatpush3.msra.mxu1 %v1186_v4 }
 0x13b   : > { %1565 = vmatprep.subr.mxu0 %v927_v5  ;;  %1532 = vmatprep.subr.mxu1 %v1185_v6 }
 0x13c   : > { %1566 = vmatpush3.msra.mxu0 %v927_v5  ;;  %1533 = vmatpush3.msra.mxu1 %v1185_v6 }
 0x13d   : > { %1567 = vmatprep.subr.mxu0 %v926_v7  ;;  %1534 = vmatprep.subr.mxu1 %v1184_v8 }
 0x13e   : > { %1568 = vmatpush3.msra.mxu0 %v926_v7  ;;  %1535 = vmatpush3.msra.mxu1 %v1184_v8 }
 0x13f   : > { %1569 = vmatprep.subr.mxu0 %v925_v9  ;;  %1536 = vmatprep.subr.mxu1 %v1183_v10 }
 0x140   : > { %1570 = vmatpush3.msra.mxu0 %v925_v9  ;;  %1537 = vmatpush3.msra.mxu1 %v1183_v10 }
 0x141   : > { %1571 = vmatprep.subr.mxu0 %v924_v11  ;;  %1539 = vmatmul.mubr.f32.vlgmr.msra.gmra.mxu1 %v1974_v39 }
 0x142   : > { %1572 = vmatpush3.msra.mxu0 %v924_v11  ;;  %1573 = vmatprep.mubr.f32.mxu0 %v1745_v15 }
 0x143   : > { %1574 = vmatmul.mubr.f32.vlgmr.msra.gmra.mxu0 %v1747_v16 }
 0x1e1   : > { %v1470_v12 = vpop.f32.mrf.mxu1 }
 0x1e2   : > { %v1505_v13 = vpop.f32.mrf.mxu0 }
 0x1e3   : > { %v733_v14 = vpop.f32.mrf.mxu1  ;;  %v814_v18 = vadd.f32 %v1505_v13, %v1470_v12 }
 0x1e4   : > { %v808_v17 = vpop.f32.mrf.mxu0 }
 0x1e5   : > { %v809_v22 = vadd.f32 %v808_v17, %v733_v14 }
 0x201   : > { %v1540_v19 = vpop.f32.mrf.mxu1 }
 0x202   : > { %v912_v23 = vadd.f32 %v1540_v19, %v814_v18 }
 0x203   : > { %v902_v15 = vpop.f32.mrf.mxu1  ;;  %v1575_v24 = vpop.f32.mrf.mxu0 }
 0x204   : > { %v921_v16 = vadd.f32 %v1199_v20, %v912_v23  ;;  %v911_v25 = vadd.f32 %v902_v15, %v809_v22  ;;  %v1019_v26 = vadd.f32 %v1575_v24, %v1200_v21 }
 0x205   : > { %v1013_v27 = vpop.f32.mrf.mxu0 }
 0x206   : > { %v923_v28 = vmax.f32 %v921_v16, 0.0  ;;  %v920_v29 = vadd.f32 %v1199_v20, %v911_v25  ;;  %v1014_v32 = vadd.f32 %v1200_v21, %v1013_v27 }
 0x208   : > { %v922_v30 = vmax.f32 %v920_v29, 0.0  ;;  %v1023_v31 = vadd.f32 %v1019_v26, %v923_v28 }
 0x20a   : > { %1025 = vst [vmem:[%s316_s11 + $0x8] sm:$0xff] %v1023_v31  ;;  %v1022_v33 = vadd.f32 %v1014_v32, %v922_v30 }
 0x20c   : > { %1024 = vst [vmem:[%s316_s11] sm:$0xff] %v1022_v33 }
 0x20d PF: > { %s17_s26 = sadd.s32 1, %s1623_s26   ;;  %s2106_s24 = smov %s1619_s25 }
 0x20e   : > { %p14_p5 = scmp.ge.s32.totalorder %s17_s26, 4   ;;  %s2107_s25 = smov %s2109_s27 }
 0x210   :  { %16 = sbr.rel (!%p14_p5) target bundleno = 2 (0x2), region = 90 }

// kernel: tcn_forward.4
= control target key start
LH: loop header
LB: loop body
LE: loop exit
PB: predicated region body
PF: predicated region fallthrough
CT: control target
= control target key end

     0   :  { %s1666_s24 = smov 0   ;;  %s1668_s25 = smov 0   ;;  %s2098_s0 = inlined_call_operand.vmem [shape: f32[2,16,128], index: 0, kind: input, shape index: {}]   ;;  %s2099_s1 = inlined_call_operand.vmem [shape: f32[3,128,128], index: 1, kind: input, shape index: {}]   ;;  %s2100_s2 = inlined_call_operand.vmem [shape: f32[1,128], index: 2, kind: input, shape index: {}]   ;;  %s2101_s3 = inlined_call_operand.vmem [shape: f32[3,128,128], index: 3, kind: input, shape index: {}]   ;;  %s2102_s4 = inlined_call_operand.vmem [shape: f32[1,128], index: 4, kind: input, shape index: {}]   ;;  %s2103_s5 = inlined_call_operand.vmem [shape: f32[1,128,128], index: 5, kind: input, shape index: {}]   ;;  %s2104_s6 = inlined_call_operand.vmem [shape: f32[1,128], index: 6, kind: input, shape index: {}]   ;;  %s2105_s7 = inlined_call_operand.vmem [shape: f32[2,16,128], index: 7, kind: output, shape index: {}]  }
   0x1   :  { %s1670_s26 = smov 0  }
   0x2 LB: > { %s29_s27 = sadd.s32 1, %s1619_s25  ;;  %p1129_p0 = scmp.ge.s32.totalorder %s1623_s26, 1  ;;  %s1623_s26 = sphi %s1670_s26, %s17_s26   ;;  %s1619_s25 = sphi %s1668_s25, %s2107_s25   ;;  %s1615_s24 = sphi %s1666_s24, %s2106_s24  }
   0x3   : > { %p31_p1 = scmp.ge.s32.totalorder %s29_s27, 2  ;;  %p258_p2 = scmp.lt.s32.totalorder %s1623_s26, 3 }
   0x5   : > { %s2109_s27 = smov (%p31_p1, %s29_s27), 0  ;;  %p259_p3 = pnand %p1129_p0, %p258_p2 }
   0x6   : > { %p299_p4 = scmp.lt.s32.totalorder (!%p259_p3), %s1615_s24, 1  ;;  %s322_s11 = smul.u32 (!%p259_p3), 24, %s1615_s24 }
   0x7   : > { %262 = sbr.rel (%p259_p3) target bundleno = 525 (0x20d), region = 48 }
   0x8   : > { %s1718_s28 = scalar_lea.vmem (!%p259_p3), [#allocation2], %s322_s11  ;;  %s1877_s21 = scalar_lea.vmem (!%p259_p3), [#allocation3], %s322_s11 }
   0xc   : > { %v1149_v0 = vld [vmem:[%s2099_s1 + $0xf8] sm:$0xff]  ;;  %v1148_v2 = vld [vmem:[%s2099_s1 + $0xf0] sm:$0xff]  ;;  %v1147_v4 = vld [vmem:[%s2099_s1 + $0xe8] sm:$0xff]  ;;  %s1707_s18 = scalar_select %p299_p4, %s1615_s24, 1  ;;  %v1625_v8 = vmov 0.0  }
   0xd   : > { %v350_v1 = vld [vmem:[%s2099_s1 + $0x78] sm:$0xff]  ;;  %1331 = vmatprep.subr.mxu0 %v1149_v0  ;;  %v349_v3 = vld [vmem:[%s2099_s1 + $0x70] sm:$0xff]  ;;  %v348_v5 = vld [vmem:[%s2099_s1 + $0x68] sm:$0xff]  ;;  %324 = vst [vmem:[%s1718_s28] sm:$0xff] %v1625_v8 }
   0xe   : > { %1366 = vmatprep.subr.mxu1 %v350_v1  ;;  %1332 = vmatpush3.msra.mxu0 %v1149_v0  ;;  %v1146_v6 = vld [vmem:[%s2099_s1 + $0xe0] sm:$0xff]  ;;  %s1203_s23 = sshll.u32 %s1707_s18, 4  ;;  %v1145_v9 = vld [vmem:[%s2099_s1 + $0xd8] sm:$0xff]  ;;  %v1144_v11 = vld [vmem:[%s2099_s1 + $0xd0] sm:$0xff]  ;;  %326 = vst [vmem:[%s1877_s21] sm:$0xff] %v1625_v8 }
   0xf   : > { %1367 = vmatpush3.msra.mxu1 %v350_v1  ;;  %1333 = vmatprep.subr.mxu0 %v1148_v2  ;;  %v347_v7 = vld [vmem:[%s2099_s1 + $0x60] sm:$0xff]  ;;  %v346_v10 = vld [vmem:[%s2099_s1 + $0x58] sm:$0xff]  ;;  %s306_s13 = scalar_lea.vmem %s2098_s0, %s1203_s23  ;;  %v345_v12 = vld [vmem:[%s2099_s1 + $0x50] sm:$0xff]  ;;  %s316_s11 = scalar_lea.vmem %s2105_s7, %s1203_s23 }
  0x10   : > { %1368 = vmatprep.subr.mxu1 %v349_v3  ;;  %1334 = vmatpush3.msra.mxu0 %v1148_v2  ;;  %v1143_v13 = vld [vmem:[%s2099_s1 + $0xc8] sm:$0xff]  ;;  %v1745_v15 = vld [vmem:[%s306_s13] sm:$0xff]  ;;  %v1141_v19 = vld [vmem:[%s2099_s1 + $0xb8] sm:$0xff] }
  0x11   : > { %1369 = vmatpush3.msra.mxu1 %v349_v3  ;;  %1335 = vmatprep.subr.mxu0 %v1147_v4  ;;  %v344_v14 = vld [vmem:[%s2099_s1 + $0x48] sm:$0xff]  ;;  %331 = vst [vmem:[%s1718_s28 + $0x8] sm:$0xff] %v1745_v15  ;;  %v1142_v17 = vld [vmem:[%s2099_s1 + $0xc0] sm:$0xff]  ;;  %v342_v20 = vld [vmem:[%s2099_s1 + $0x38] sm:$0xff] }
  0x12   : > { %1370 = vmatprep.subr.mxu1 %v348_v5  ;;  %1336 = vmatpush3.msra.mxu0 %v1147_v4  ;;  %v1747_v16 = vld [vmem:[%s306_s13 + $0x8] sm:$0xff]  ;;  %v343_v18 = vld [vmem:[%s2099_s1 + $0x40] sm:$0xff]  ;;  %v1140_v21 = vld [vmem:[%s2099_s1 + $0xb0] sm:$0xff] }
  0x13   : > { %1371 = vmatpush3.msra.mxu1 %v348_v5  ;;  %1337 = vmatprep.subr.mxu0 %v1146_v6  ;;  %332 = vst [vmem:[%s1718_s28 + $0x10] sm:$0xff] %v1747_v16  ;;  %v341_v22 = vld [vmem:[%s2099_s1 + $0x30] sm:$0xff]  ;;  %v1139_v23 = vld [vmem:[%s2099_s1 + $0xa8] sm:$0xff]  ;;  %v1138_v27 = vld [vmem:[%s2099_s1 + $0xa0] sm:$0xff] }
  0x14   : > { %1372 = vmatprep.subr.mxu1 %v347_v7  ;;  %1338 = vmatpush3.msra.mxu0 %v1146_v6  ;;  %v340_v24 = vld [vmem:[%s2099_s1 + $0x28] sm:$0xff]  ;;  %v339_v28 = vld [vmem:[%s2099_s1 + $0x20] sm:$0xff]  ;;  %v1137_v29 = vld [vmem:[%s2099_s1 + $0x98] sm:$0xff] }
  0x15   : > { %1373 = vmatpush3.msra.mxu1 %v347_v7  ;;  %1339 = vmatprep.subr.mxu0 %v1145_v9  ;;  %v338_v30 = vld [vmem:[%s2099_s1 + $0x18] sm:$0xff]  ;;  %v1136_v31 = vld [vmem:[%s2099_s1 + $0x90] sm:$0xff]  ;;  %v1135_v33 = vld [vmem:[%s2099_s1 + $0x88] sm:$0xff] }
  0x16   : > { %1374 = vmatprep.subr.mxu1 %v346_v10  ;;  %1340 = vmatpush3.msra.mxu0 %v1145_v9  ;;  %v337_v32 = vld [vmem:[%s2099_s1 + $0x10] sm:$0xff]  ;;  %v336_v34 = vld [vmem:[%s2099_s1 + $0x8] sm:$0xff]  ;;  %v1134_v35 = vld [vmem:[%s2099_s1 + $0x80] sm:$0xff] }
  0x17   : > { %1375 = vmatpush3.msra.mxu1 %v346_v10  ;;  %1341 = vmatprep.subr.mxu0 %v1144_v11  ;;  %v335_v36 = vld [vmem:[%s2099_s1] sm:$0xff]  ;;  %v1165_v39 = vld [vmem:[%s2099_s1 + $0x178] sm:$0xff]  ;;  %v1164_v40 = vld [vmem:[%s2099_s1 + $0x170] sm:$0xff] }
  0x18   : > { %1376 = vmatprep.subr.mxu1 %v345_v12  ;;  %1342 = vmatpush3.msra.mxu0 %v1144_v11  ;;  %v351_v25 = vld [vmem:[%s1718_s28 + $0x6] sm:$0xff]  ;;  %v1161_v43 = vld [vmem:[%s2099_s1 + $0x158] sm:$0xff]  ;;  %v1160_v44 = vld [vmem:[%s2099_s1 + $0x150] sm:$0xff] }
  0x19   : > { %1377 = vmatpush3.msra.mxu1 %v345_v12  ;;  %1343 = vmatprep.subr.mxu0 %v1143_v13  ;;  %v333_v26 = vld [vmem:[%s1718_s28 + $0x4] sm:$0xff]  ;;  %v1157_v47 = vld [vmem:[%s2099_s1 + $0x138] sm:$0xff]  ;;  %v1156_v48 = vld [vmem:[%s2099_s1 + $0x130] sm:$0xff] }
  0x1a   : > { %1378 = vmatprep.subr.mxu1 %v344_v14  ;;  %1344 = vmatpush3.msra.mxu0 %v1143_v13  ;;  %1027 = vst [vmem:[%s1718_s28] sm:$0xff] %v1747_v16  ;;  %v352_v37 = vld [vmem:[%s1718_s28 + $0xe] sm:$0xff]  ;;  %v1162_v42 = vld [vmem:[%s2099_s1 + $0x160] sm:$0xff]  ;;  %v1153_v51 = vld [vmem:[%s2099_s1 + $0x118] sm:$0xff] }
  0x1b   : > { %1379 = vmatpush3.msra.mxu1 %v344_v14  ;;  %1345 = vmatprep.subr.mxu0 %v1142_v17  ;;  %v334_v38 = vld [vmem:[%s1718_s28 + $0xc] sm:$0xff]  ;;  %v1158_v46 = vld [vmem:[%s2099_s1 + $0x140] sm:$0xff]  ;;  %v1182_v55 = vld [vmem:[%s2101_s3 + $0xf8] sm:$0xff] }
  0x1c   : > { %1380 = vmatprep.subr.mxu1 %v343_v18  ;;  %1346 = vmatpush3.msra.mxu0 %v1142_v17  ;;  %v1163_v41 = vld [vmem:[%s2099_s1 + $0x168] sm:$0xff]  ;;  %v1154_v50 = vld [vmem:[%s2099_s1 + $0x120] sm:$0xff]  ;;  %v1152_v52 = vld [vmem:[%s2099_s1 + $0x110] sm:$0xff] }
  0x1d   : > { %1381 = vmatpush3.msra.mxu1 %v343_v18  ;;  %1347 = vmatprep.subr.mxu0 %v1141_v19  ;;  %v1159_v45 = vld [vmem:[%s2099_s1 + $0x148] sm:$0xff]  ;;  %v1150_v54 = vld [vmem:[%s2099_s1 + $0x100] sm:$0xff]  ;;  %v647_v56 = vld [vmem:[%s2101_s3 + $0x78] sm:$0xff] }
  0x1e   : > { %1382 = vmatprep.subr.mxu1 %v342_v20  ;;  %1348 = vmatpush3.msra.mxu0 %v1141_v19  ;;  %v1155_v49 = vld [vmem:[%s2099_s1 + $0x128] sm:$0xff]  ;;  %v1181_v57 = vld [vmem:[%s2101_s3 + $0xf0] sm:$0xff]  ;;  %v1179_v61 = vld [vmem:[%s2101_s3 + $0xe0] sm:$0xff] }
  0x1f   : > { %1383 = vmatpush3.msra.mxu1 %v342_v20  ;;  %1349 = vmatprep.subr.mxu0 %v1140_v21  ;;  %v1151_v53 = vld [vmem:[%s2099_s1 + $0x108] sm:$0xff]  ;;  %v646_v58 = vld [vmem:[%s2101_s3 + $0x70] sm:$0xff]  ;;  %v644_v62 = vld [vmem:[%s2101_s3 + $0x60] sm:$0xff] }
  0x20   : > { %1384 = vmatprep.subr.mxu1 %v341_v22  ;;  %1350 = vmatpush3.msra.mxu0 %v1140_v21  ;;  %v1180_v59 = vld [vmem:[%s2101_s3 + $0xe8] sm:$0xff]  ;;  %v1178_v63 = vld [vmem:[%s2101_s3 + $0xd8] sm:$0xff]  ;;  %v1177_v1 = vld [vmem:[%s2101_s3 + $0xd0] sm:$0xff] }
  0x21   : > { %1385 = vmatpush3.msra.mxu1 %v341_v22  ;;  %1351 = vmatprep.subr.mxu0 %v1139_v23  ;;  %v645_v60 = vld [vmem:[%s2101_s3 + $0x68] sm:$0xff]  ;;  %v643_v0 = vld [vmem:[%s2101_s3 + $0x58] sm:$0xff]  ;;  %v642_v2 = vld [vmem:[%s2101_s3 + $0x50] sm:$0xff] }
  0x22   : > { %1386 = vmatprep.subr.mxu1 %v340_v24  ;;  %1352 = vmatpush3.msra.mxu0 %v1139_v23  ;;  %v1176_v3 = vld [vmem:[%s2101_s3 + $0xc8] sm:$0xff]  ;;  %v1175_v5 = vld [vmem:[%s2101_s3 + $0xc0] sm:$0xff]  ;;  %v1174_v7 = vld [vmem:[%s2101_s3 + $0xb8] sm:$0xff] }
  0x23   : > { %1387 = vmatpush3.msra.mxu1 %v340_v24  ;;  %1353 = vmatprep.subr.mxu0 %v1138_v27  ;;  %v641_v4 = vld [vmem:[%s2101_s3 + $0x48] sm:$0xff]  ;;  %v640_v6 = vld [vmem:[%s2101_s3 + $0x40] sm:$0xff]  ;;  %v639_v8 = vld [vmem:[%s2101_s3 + $0x38] sm:$0xff] }
  0x24   : > { %1388 = vmatprep.subr.mxu1 %v339_v28  ;;  %1354 = vmatpush3.msra.mxu0 %v1138_v27  ;;  %v1173_v9 = vld [vmem:[%s2101_s3 + $0xb0] sm:$0xff]  ;;  %v1172_v11 = vld [vmem:[%s2101_s3 + $0xa8] sm:$0xff]  ;;  %v1171_v13 = vld [vmem:[%s2101_s3 + $0xa0] sm:$0xff] }
  0x25   : > { %1389 = vmatpush3.msra.mxu1 %v339_v28  ;;  %1355 = vmatprep.subr.mxu0 %v1137_v29  ;;  %v638_v10 = vld [vmem:[%s2101_s3 + $0x30] sm:$0xff]  ;;  %v637_v12 = vld [vmem:[%s2101_s3 + $0x28] sm:$0xff]  ;;  %v636_v14 = vld [vmem:[%s2101_s3 + $0x20] sm:$0xff] }
  0x26   : > { %1390 = vmatprep.subr.mxu1 %v338_v30  ;;  %1356 = vmatpush3.msra.mxu0 %v1137_v29  ;;  %v1170_v17 = vld [vmem:[%s2101_s3 + $0x98] sm:$0xff]  ;;  %v1169_v19 = vld [vmem:[%s2101_s3 + $0x90] sm:$0xff]  ;;  %v1168_v21 = vld [vmem:[%s2101_s3 + $0x88] sm:$0xff] }
  0x27   : > { %1391 = vmatpush3.msra.mxu1 %v338_v30  ;;  %1357 = vmatprep.subr.mxu0 %v1136_v31  ;;  %v635_v18 = vld [vmem:[%s2101_s3 + $0x18] sm:$0xff]  ;;  %v634_v20 = vld [vmem:[%s2101_s3 + $0x10] sm:$0xff]  ;;  %v633_v22 = vld [vmem:[%s2101_s3 + $0x8] sm:$0xff] }
  0x28   : > { %1392 = vmatprep.subr.mxu1 %v337_v32  ;;  %1358 = vmatpush3.msra.mxu0 %v1136_v31  ;;  %v1167_v23 = vld [vmem:[%s2101_s3 + $0x80] sm:$0xff] }
  0x29   : > { %1393 = vmatpush3.msra.mxu1 %v337_v32  ;;  %1359 = vmatprep.subr.mxu0 %v1135_v33  ;;  %v632_v24 = vld [vmem:[%s2101_s3] sm:$0xff] }
  0x2a   : > { %1394 = vmatprep.subr.mxu1 %v336_v34  ;;  %1360 = vmatpush3.msra.mxu0 %v1135_v33  ;;  %v1166_v33 = vld [vmem:[%s2100_s2] ss:$0 sm:$0xff] }
  0x2b   : > { %1395 = vmatpush3.msra.mxu1 %v336_v34  ;;  %1361 = vmatprep.subr.mxu0 %v1134_v35 }
  0x2c   : > { %1396 = vmatprep.subr.mxu1 %v335_v36  ;;  %1362 = vmatpush3.msra.mxu0 %v1134_v35 }
  0x2d   : > { %1363 = vmatprep.mubr.f32.mxu0 %v351_v25  ;;  %1397 = vmatpush3.msra.mxu1 %v335_v36  ;;  %v1198_v25 = vld [vmem:[%s2101_s3 + $0x178] sm:$0xff] }
  0x2e   : > { %1398 = vmatprep.mubr.f32.mxu1 %v333_v26  ;;  %1364 = vmatmul.mubr.f32.vlgmr.msra.gmra.mxu0 %v352_v37  ;;  %v939_v26 = vld [vmem:[%s2103_s5 + $0x78] sm:$0xff] }
  0x2f   : > { %1399 = vmatmul.mubr.f32.vlgmr.msra.gmra.mxu1 %v334_v38  ;;  %1401 = vmatprep.subr.mxu0 %v1165_v39 }
  0x30   : > { %1433 = vmatprep.mubr.f32.mxu0 %v1745_v15  ;;  %1402 = vmatpush3.msra.mxu0 %v1165_v39 }
  0x31   : > { %1403 = vmatprep.subr.mxu0 %v1164_v40  ;;  %1436 = vmatprep.subr.mxu1 %v1182_v55 }
  0x32   : > { %1404 = vmatpush3.msra.mxu0 %v1164_v40  ;;  %1437 = vmatpush3.msra.mxu1 %v1182_v55  ;;  %v934_v55 = vld [vmem:[%s2103_s5 + $0x50] sm:$0xff] }
  0x33   : > { %1405 = vmatprep.subr.mxu0 %v1163_v41  ;;  %1438 = vmatprep.subr.mxu1 %v1181_v57 }
  0x34   : > { %1406 = vmatpush3.msra.mxu0 %v1163_v41  ;;  %1439 = vmatpush3.msra.mxu1 %v1181_v57  ;;  %v933_v57 = vld [vmem:[%s2103_s5 + $0x48] sm:$0xff] }
  0x35   : > { %1407 = vmatprep.subr.mxu0 %v1162_v42  ;;  %1440 = vmatprep.subr.mxu1 %v1180_v59 }
  0x36   : > { %1408 = vmatpush3.msra.mxu0 %v1162_v42  ;;  %1441 = vmatpush3.msra.mxu1 %v1180_v59  ;;  %v932_v59 = vld [vmem:[%s2103_s5 + $0x40] sm:$0xff] }
  0x37   : > { %1409 = vmatprep.subr.mxu0 %v1161_v43  ;;  %1442 = vmatprep.subr.mxu1 %v1179_v61 }
  0x38   : > { %1410 = vmatpush3.msra.mxu0 %v1161_v43  ;;  %1443 = vmatpush3.msra.mxu1 %v1179_v61  ;;  %v931_v61 = vld [vmem:[%s2103_s5 + $0x38] sm:$0xff] }
  0x39   : > { %1411 = vmatprep.subr.mxu0 %v1160_v44  ;;  %1444 = vmatprep.subr.mxu1 %v1178_v63 }
  0x3a   : > { %1412 = vmatpush3.msra.mxu0 %v1160_v44  ;;  %1445 = vmatpush3.msra.mxu1 %v1178_v63  ;;  %v930_v63 = vld [vmem:[%s2103_s5 + $0x30] sm:$0xff] }
  0x3b   : > { %1413 = vmatprep.subr.mxu0 %v1159_v45  ;;  %1446 = vmatprep.subr.mxu1 %v1177_v1 }
  0x3c   : > { %1414 = vmatpush3.msra.mxu0 %v1159_v45  ;;  %1447 = vmatpush3.msra.mxu1 %v1177_v1  ;;  %v929_v1 = vld [vmem:[%s2103_s5 + $0x28] sm:$0xff] }
  0x3d   : > { %1415 = vmatprep.subr.mxu0 %v1158_v46  ;;  %1448 = vmatprep.subr.mxu1 %v1176_v3 }
  0x3e   : > { %1416 = vmatpush3.msra.mxu0 %v1158_v46  ;;  %1449 = vmatpush3.msra.mxu1 %v1176_v3  ;;  %v1197_v46 = vld [vmem:[%s2101_s3 + $0x170] sm:$0xff]  ;;  %v928_v3 = vld [vmem:[%s2103_s5 + $0x20] sm:$0xff] }
  0x3f   : > { %1417 = vmatprep.subr.mxu0 %v1157_v47  ;;  %1450 = vmatprep.subr.mxu1 %v1175_v5 }
  0x40   : > { %1418 = vmatpush3.msra.mxu0 %v1157_v47  ;;  %1451 = vmatpush3.msra.mxu1 %v1175_v5  ;;  %v938_v47 = vld [vmem:[%s2103_s5 + $0x70] sm:$0xff]  ;;  %v927_v5 = vld [vmem:[%s2103_s5 + $0x18] sm:$0xff] }
  0x41   : > { %1419 = vmatprep.subr.mxu0 %v1156_v48  ;;  %1452 = vmatprep.subr.mxu1 %v1174_v7 }
  0x42   : > { %1420 = vmatpush3.msra.mxu0 %v1156_v48  ;;  %1453 = vmatpush3.msra.mxu1 %v1174_v7  ;;  %v1196_v48 = vld [vmem:[%s2101_s3 + $0x168] sm:$0xff]  ;;  %v926_v7 = vld [vmem:[%s2103_s5 + $0x10] sm:$0xff] }
  0x43   : > { %1421 = vmatprep.subr.mxu0 %v1155_v49  ;;  %1454 = vmatprep.subr.mxu1 %v1173_v9 }
  0x44   : > { %1422 = vmatpush3.msra.mxu0 %v1155_v49  ;;  %1455 = vmatpush3.msra.mxu1 %v1173_v9  ;;  %v937_v49 = vld [vmem:[%s2103_s5 + $0x68] sm:$0xff] }
  0x45   : > { %1423 = vmatprep.subr.mxu0 %v1154_v50  ;;  %1456 = vmatprep.subr.mxu1 %v1172_v11  ;;  %v925_v9 = vld [vmem:[%s2103_s5 + $0x8] sm:$0xff] }
  0x46   : > { %1424 = vmatpush3.msra.mxu0 %v1154_v50  ;;  %1457 = vmatpush3.msra.mxu1 %v1172_v11  ;;  %v1195_v50 = vld [vmem:[%s2101_s3 + $0x160] sm:$0xff] }
  0x47   : > { %1425 = vmatprep.subr.mxu0 %v1153_v51  ;;  %1458 = vmatprep.subr.mxu1 %v1171_v13  ;;  %v924_v11 = vld [vmem:[%s2103_s5] sm:$0xff] }
  0x48   : > { %1426 = vmatpush3.msra.mxu0 %v1153_v51  ;;  %1459 = vmatpush3.msra.mxu1 %v1171_v13  ;;  %v936_v51 = vld [vmem:[%s2103_s5 + $0x60] sm:$0xff] }
  0x49   : > { %1427 = vmatprep.subr.mxu0 %v1152_v52  ;;  %1460 = vmatprep.subr.mxu1 %v1170_v17 }
  0x4a   : > { %1428 = vmatpush3.msra.mxu0 %v1152_v52  ;;  %1461 = vmatpush3.msra.mxu1 %v1170_v17  ;;  %v1194_v52 = vld [vmem:[%s2101_s3 + $0x158] sm:$0xff] }
  0x4b   : > { %1429 = vmatprep.subr.mxu0 %v1151_v53  ;;  %1462 = vmatprep.subr.mxu1 %v1169_v19 }
  0x4c   : > { %1430 = vmatpush3.msra.mxu0 %v1151_v53  ;;  %1463 = vmatpush3.msra.mxu1 %v1169_v19  ;;  %v935_v53 = vld [vmem:[%s2103_s5 + $0x58] sm:$0xff] }
  0x4d   : > { %1431 = vmatprep.subr.mxu0 %v1150_v54  ;;  %1464 = vmatprep.subr.mxu1 %v1168_v21 }
  0x4e   : > { %1432 = vmatpush3.msra.mxu0 %v1150_v54  ;;  %1465 = vmatpush3.msra.mxu1 %v1168_v21  ;;  %v1193_v54 = vld [vmem:[%s2101_s3 + $0x150] sm:$0xff]  ;;  %v1200_v21 = vld [vmem:[%s2104_s6] ss:$0 sm:$0xff] }
  0x4f   : > { %1434 = vmatmul.mubr.f32.vlgmr.msra.gmra.mxu0 %v1747_v16  ;;  %1471 = vmatprep.subr.mxu0 %v647_v56 }
  0x50   : > { %1472 = vmatpush3.msra.mxu0 %v647_v56  ;;  %1466 = vmatprep.subr.mxu1 %v1167_v23  ;;  %v1192_v56 = vld [vmem:[%s2101_s3 + $0x148] sm:$0xff] }
  0x51   : > { %1473 = vmatprep.subr.mxu0 %v646_v58  ;;  %1467 = vmatpush3.msra.mxu1 %v1167_v23 }
  0x52   : > { %1474 = vmatpush3.msra.mxu0 %v646_v58  ;;  %1506 = vmatprep.subr.mxu1 %v1198_v25  ;;  %v1191_v58 = vld [vmem:[%s2101_s3 + $0x140] sm:$0xff] }
  0x53   : > { %1475 = vmatprep.subr.mxu0 %v645_v60 }
  0x54   : > { %1476 = vmatpush3.msra.mxu0 %v645_v60  ;;  %v1190_v60 = vld [vmem:[%s2101_s3 + $0x138] sm:$0xff] }
  0x55   : > { %1477 = vmatprep.subr.mxu0 %v644_v62 }
  0x56   : > { %1478 = vmatpush3.msra.mxu0 %v644_v62  ;;  %v1189_v62 = vld [vmem:[%s2101_s3 + $0x130] sm:$0xff] }
  0x57   : > { %1479 = vmatprep.subr.mxu0 %v643_v0 }
  0x58   : > { %1480 = vmatpush3.msra.mxu0 %v643_v0  ;;  %v1188_v0 = vld [vmem:[%s2101_s3 + $0x128] sm:$0xff] }
  0x59   : > { %1481 = vmatprep.subr.mxu0 %v642_v2 }
  0x5a   : > { %1482 = vmatpush3.msra.mxu0 %v642_v2  ;;  %v1187_v2 = vld [vmem:[%s2101_s3 + $0x120] sm:$0xff] }
  0x5b   : > { %1483 = vmatprep.subr.mxu0 %v641_v4 }
  0x5c   : > { %1484 = vmatpush3.msra.mxu0 %v641_v4  ;;  %v1186_v4 = vld [vmem:[%s2101_s3 + $0x118] sm:$0xff] }
  0x5d   : > { %1485 = vmatprep.subr.mxu0 %v640_v6 }
  0x5e   : > { %1486 = vmatpush3.msra.mxu0 %v640_v6  ;;  %v1185_v6 = vld [vmem:[%s2101_s3 + $0x110] sm:$0xff] }
  0x5f   : > { %1487 = vmatprep.subr.mxu0 %v639_v8 }
  0x60   : > { %1488 = vmatpush3.msra.mxu0 %v639_v8  ;;  %v1184_v8 = vld [vmem:[%s2101_s3 + $0x108] sm:$0xff] }
  0x61   : > { %1489 = vmatprep.subr.mxu0 %v638_v10 }
  0x62   : > { %1490 = vmatpush3.msra.mxu0 %v638_v10  ;;  %v1183_v10 = vld [vmem:[%s2101_s3 + $0x100] sm:$0xff] }
  0x63   : > { %1491 = vmatprep.subr.mxu0 %v637_v12 }
  0x64   : > { %1492 = vmatpush3.msra.mxu0 %v637_v12 }
  0x65   : > { %1493 = vmatprep.subr.mxu0 %v636_v14 }
  0x66   : > { %1494 = vmatpush3.msra.mxu0 %v636_v14 }
  0x67   : > { %1495 = vmatprep.subr.mxu0 %v635_v18 }
  0x68   : > { %1496 = vmatpush3.msra.mxu0 %v635_v18 }
  0x69   : > { %1497 = vmatprep.subr.mxu0 %v634_v20 }
  0x6a   : > { %1498 = vmatpush3.msra.mxu0 %v634_v20  ;;  %v1199_v20 = vld [vmem:[%s2102_s4] ss:$0 sm:$0xff] }
  0x6b   : > { %1499 = vmatprep.subr.mxu0 %v633_v22 }
  0x6c   : > { %1500 = vmatpush3.msra.mxu0 %v633_v22 }
  0x6d   : > { %1501 = vmatprep.subr.mxu0 %v632_v24 }
  0x6e   : > { %1502 = vmatpush3.msra.mxu0 %v632_v24 }
  0x6f   : > { %1541 = vmatprep.subr.mxu0 %v939_v26 }
  0xee   : > { %v1365_v27 = vpop.f32.mrf.mxu0 }
  0xef   : > { %v1400_v28 = vpop.f32.mrf.mxu1 }
  0xf0   : > { %v436_v29 = vpop.f32.mrf.mxu0  ;;  %v517_v31 = vadd.f32 %v1400_v28, %v1365_v27 }
  0xf1   : > { %v511_v30 = vpop.f32.mrf.mxu1 }
  0xf2   : > { %v512_v34 = vadd.f32 %v511_v30, %v436_v29 }
 0x10f   : > { %v1435_v32 = vpop.f32.mrf.mxu0 }
 0x110   : > { %v615_v35 = vadd.f32 %v1435_v32, %v517_v31 }
 0x111   : > { %v605_v36 = vpop.f32.mrf.mxu0 }
 0x112   : > { %v624_v37 = vadd.f32 %v1166_v33, %v615_v35  ;;  %v614_v38 = vadd.f32 %v605_v36, %v512_v34 }
 0x114   : > { %v1974_v39 = vmax.f32 %v624_v37, 0.0  ;;  %v623_v40 = vadd.f32 %v1166_v33, %v614_v38 }
 0x116   : > { %629 = vst [vmem:[%s1877_s21 + $0x10] sm:$0xff] %v1974_v39  ;;  %v625_v41 = vmax.f32 %v623_v40, 0.0 }
 0x118   : > { %628 = vst [vmem:[%s1877_s21 + $0x8] sm:$0xff] %v625_v41 }
 0x11f   : > { %v648_v42 = vld [vmem:[%s1877_s21 + $0x6] sm:$0xff]  ;;  %v649_v44 = vld [vmem:[%s1877_s21 + $0xe] sm:$0xff] }
 0x120   : > { %v630_v43 = vld [vmem:[%s1877_s21 + $0x4] sm:$0xff]  ;;  %1468 = vmatprep.mubr.f32.mxu1 %v648_v42  ;;  %v631_v45 = vld [vmem:[%s1877_s21 + $0xc] sm:$0xff] }
 0x121   : > { %1503 = vmatprep.mubr.f32.mxu0 %v630_v43  ;;  %1029 = vst [vmem:[%s1877_s21] sm:$0xff] %v1974_v39  ;;  %1469 = vmatmul.mubr.f32.vlgmr.msra.gmra.mxu1 %v649_v44 }
 0x122   : > { %1504 = vmatmul.mubr.f32.vlgmr.msra.gmra.mxu0 %v631_v45  ;;  %1507 = vmatpush3.msra.mxu1 %v1198_v25 }
 0x123   : > { %1538 = vmatprep.mubr.f32.mxu1 %v625_v41  ;;  %1508 = vmatprep.subr.mxu1 %v1197_v46 }
 0x124   : > { %1542 = vmatpush3.msra.mxu0 %v939_v26  ;;  %1509 = vmatpush3.msra.mxu1 %v1197_v46 }
 0x125   : > { %1543 = vmatprep.subr.mxu0 %v938_v47  ;;  %1510 = vmatprep.subr.mxu1 %v1196_v48 }
 0x126   : > { %1544 = vmatpush3.msra.mxu0 %v938_v47  ;;  %1511 = vmatpush3.msra.mxu1 %v1196_v48 }
 0x127   : > { %1545 = vmatprep.subr.mxu0 %v937_v49  ;;  %1512 = vmatprep.subr.mxu1 %v1195_v50 }
 0x128   : > { %1546 = vmatpush3.msra.mxu0 %v937_v49  ;;  %1513 = vmatpush3.msra.mxu1 %v1195_v50 }
 0x129   : > { %1547 = vmatprep.subr.mxu0 %v936_v51  ;;  %1514 = vmatprep.subr.mxu1 %v1194_v52 }
 0x12a   : > { %1548 = vmatpush3.msra.mxu0 %v936_v51  ;;  %1515 = vmatpush3.msra.mxu1 %v1194_v52 }
 0x12b   : > { %1549 = vmatprep.subr.mxu0 %v935_v53  ;;  %1516 = vmatprep.subr.mxu1 %v1193_v54 }
 0x12c   : > { %1550 = vmatpush3.msra.mxu0 %v935_v53  ;;  %1517 = vmatpush3.msra.mxu1 %v1193_v54 }
 0x12d   : > { %1551 = vmatprep.subr.mxu0 %v934_v55  ;;  %1518 = vmatprep.subr.mxu1 %v1192_v56 }
 0x12e   : > { %1552 = vmatpush3.msra.mxu0 %v934_v55  ;;  %1519 = vmatpush3.msra.mxu1 %v1192_v56 }
 0x12f   : > { %1553 = vmatprep.subr.mxu0 %v933_v57  ;;  %1520 = vmatprep.subr.mxu1 %v1191_v58 }
 0x130   : > { %1554 = vmatpush3.msra.mxu0 %v933_v57  ;;  %1521 = vmatpush3.msra.mxu1 %v1191_v58 }
 0x131   : > { %1555 = vmatprep.subr.mxu0 %v932_v59  ;;  %1522 = vmatprep.subr.mxu1 %v1190_v60 }
 0x132   : > { %1556 = vmatpush3.msra.mxu0 %v932_v59  ;;  %1523 = vmatpush3.msra.mxu1 %v1190_v60 }
 0x133   : > { %1557 = vmatprep.subr.mxu0 %v931_v61  ;;  %1524 = vmatprep.subr.mxu1 %v1189_v62 }
 0x134   : > { %1558 = vmatpush3.msra.mxu0 %v931_v61  ;;  %1525 = vmatpush3.msra.mxu1 %v1189_v62 }
 0x135   : > { %1559 = vmatprep.subr.mxu0 %v930_v63  ;;  %1526 = vmatprep.subr.mxu1 %v1188_v0 }
 0x136   : > { %1560 = vmatpush3.msra.mxu0 %v930_v63  ;;  %1527 = vmatpush3.msra.mxu1 %v1188_v0 }
 0x137   : > { %1561 = vmatprep.subr.mxu0 %v929_v1  ;;  %1528 = vmatprep.subr.mxu1 %v1187_v2 }
 0x138   : > { %1562 = vmatpush3.msra.mxu0 %v929_v1  ;;  %1529 = vmatpush3.msra.mxu1 %v1187_v2 }
 0x139   : > { %1563 = vmatprep.subr.mxu0 %v928_v3  ;;  %1530 = vmatprep.subr.mxu1 %v1186_v4 }
 0x13a   : > { %1564 = vmatpush3.msra.mxu0 %v928_v3  ;;  %1531 = vmatpush3.msra.mxu1 %v1186_v4 }
 0x13b   : > { %1565 = vmatprep.subr.mxu0 %v927_v5  ;;  %1532 = vmatprep.subr.mxu1 %v1185_v6 }
 0x13c   : > { %1566 = vmatpush3.msra.mxu0 %v927_v5  ;;  %1533 = vmatpush3.msra.mxu1 %v1185_v6 }
 0x13d   : > { %1567 = vmatprep.subr.mxu0 %v926_v7  ;;  %1534 = vmatprep.subr.mxu1 %v1184_v8 }
 0x13e   : > { %1568 = vmatpush3.msra.mxu0 %v926_v7  ;;  %1535 = vmatpush3.msra.mxu1 %v1184_v8 }
 0x13f   : > { %1569 = vmatprep.subr.mxu0 %v925_v9  ;;  %1536 = vmatprep.subr.mxu1 %v1183_v10 }
 0x140   : > { %1570 = vmatpush3.msra.mxu0 %v925_v9  ;;  %1537 = vmatpush3.msra.mxu1 %v1183_v10 }
 0x141   : > { %1571 = vmatprep.subr.mxu0 %v924_v11  ;;  %1539 = vmatmul.mubr.f32.vlgmr.msra.gmra.mxu1 %v1974_v39 }
 0x142   : > { %1572 = vmatpush3.msra.mxu0 %v924_v11  ;;  %1573 = vmatprep.mubr.f32.mxu0 %v1745_v15 }
 0x143   : > { %1574 = vmatmul.mubr.f32.vlgmr.msra.gmra.mxu0 %v1747_v16 }
 0x1e1   : > { %v1470_v12 = vpop.f32.mrf.mxu1 }
 0x1e2   : > { %v1505_v13 = vpop.f32.mrf.mxu0 }
 0x1e3   : > { %v733_v14 = vpop.f32.mrf.mxu1  ;;  %v814_v18 = vadd.f32 %v1505_v13, %v1470_v12 }
 0x1e4   : > { %v808_v17 = vpop.f32.mrf.mxu0 }
 0x1e5   : > { %v809_v22 = vadd.f32 %v808_v17, %v733_v14 }
 0x201   : > { %v1540_v19 = vpop.f32.mrf.mxu1 }
 0x202   : > { %v912_v23 = vadd.f32 %v1540_v19, %v814_v18 }
 0x203   : > { %v902_v15 = vpop.f32.mrf.mxu1  ;;  %v1575_v24 = vpop.f32.mrf.mxu0 }
 0x204   : > { %v921_v16 = vadd.f32 %v1199_v20, %v912_v23  ;;  %v911_v25 = vadd.f32 %v902_v15, %v809_v22  ;;  %v1019_v26 = vadd.f32 %v1575_v24, %v1200_v21 }
 0x205   : > { %v1013_v27 = vpop.f32.mrf.mxu0 }
 0x206   : > { %v923_v28 = vmax.f32 %v921_v16, 0.0  ;;  %v920_v29 = vadd.f32 %v1199_v20, %v911_v25  ;;  %v1014_v32 = vadd.f32 %v1200_v21, %v1013_v27 }
 0x208   : > { %v922_v30 = vmax.f32 %v920_v29, 0.0  ;;  %v1023_v31 = vadd.f32 %v1019_v26, %v923_v28 }
 0x20a   : > { %1025 = vst [vmem:[%s316_s11 + $0x8] sm:$0xff] %v1023_v31  ;;  %v1022_v33 = vadd.f32 %v1014_v32, %v922_v30 }
 0x20c   : > { %1024 = vst [vmem:[%s316_s11] sm:$0xff] %v1022_v33 }
 0x20d PF: > { %s17_s26 = sadd.s32 1, %s1623_s26   ;;  %s2106_s24 = smov %s1619_s25 }
 0x20e   : > { %p14_p5 = scmp.ge.s32.totalorder %s17_s26, 4   ;;  %s2107_s25 = smov %s2109_s27 }
 0x210   :  { %16 = sbr.rel (!%p14_p5) target bundleno = 2 (0x2), region = 90 }

</bundles_post_ra>
